<compile_context>
chip_gen: v6e
topology: v6e:2x2x1
jax: 0.10.0
libtpu: 0.0.40
codegen_flags: <defaults>
</compile_context>

<pallas_src>
import math

import jax
import jax.numpy as jnp
from jax import lax
from jax.experimental import pallas as pl
from jax.experimental.pallas import tpu as pltpu  # noqa: F401  (TPU backend)

# ----------------------------- model dims (small) -----------------------------
HIDDEN = 32
N_HEADS = 2
HEAD_DIM = HIDDEN // N_HEADS
FFN = 64
N_LAYERS = 2
VOCAB = 100
MAX_POS = 16
TYPE_VOCAB = 2
OUTPUT_SIZE = 4
LN_EPS = 1e-12  # BERT layernorm eps


# ----------------------------- fused Pallas kernel ----------------------------
def _bert_kernel(emb_ref, mask_ref,
                 emb_ln_g_ref, emb_ln_b_ref,
                 wq_ref, wk_ref, wv_ref, bq_ref, bk_ref, bv_ref,
                 wo_ref, bo_ref, ln1_g_ref, ln1_b_ref,
                 w1_ref, b1_ref, w2_ref, b2_ref, ln2_g_ref, ln2_b_ref,
                 pool_w_ref, pool_b_ref, fc_w_ref, fc_b_ref,
                 out_ref):
    """Full BERT forward for the WHOLE batch in one invocation, all in VMEM.

    emb_ref:  (B*S, H) summed embeddings (word+pos+type), pre-LayerNorm, f32
    mask_ref: (B, S)   attention mask (1 = keep, 0 = pad), f32
    out_ref:  (B, OUTPUT_SIZE) classifier logits, f32
    Matmul weights are bf16; biases / LN params are f32.  Per-(layer,head)
    weights are stacked on a leading axis and indexed with static Python
    indices (loops fully unrolled: N_LAYERS=2, N_HEADS=2).
    """
    B, S = mask_ref.shape
    scale = 1.0 / math.sqrt(HEAD_DIM)
    c_gelu = math.sqrt(2.0 / math.pi)

    def layernorm(x, g, b):                      # f32 math
        mu = jnp.mean(x, axis=-1, keepdims=True)
        d = x - mu
        var = jnp.mean(d * d, axis=-1, keepdims=True)
        return d * lax.rsqrt(var + LN_EPS) * g + b

    # Embedding LayerNorm (no residual -> no zeros array).
    x = layernorm(emb_ref[...], emb_ln_g_ref[...], emb_ln_b_ref[...])     # (B*S, H) f32

    # BERT extended attention mask: (1 - mask) * -10000, broadcast over queries.
    mask_bias = ((1.0 - mask_ref[...]) * -10000.0)[:, None, :]            # (B, 1, S)

    for l in range(N_LAYERS):
        x_b = x.astype(jnp.bfloat16)                                      # MXU operand
        attn = bo_ref[l]                                                  # (1, H) f32
        for n in range(N_HEADS):
            hn = l * N_HEADS + n
            # Head-major projection weights: clean (B*S, H) @ (H, dh) matmuls,
            # no lane slicing of a fused QKV output.
            q = (jnp.dot(x_b, wq_ref[hn], preferred_element_type=jnp.float32)
                 + bq_ref[hn]).reshape(B, S, HEAD_DIM).astype(jnp.bfloat16)
            k = (jnp.dot(x_b, wk_ref[hn], preferred_element_type=jnp.float32)
                 + bk_ref[hn]).reshape(B, S, HEAD_DIM).astype(jnp.bfloat16)
            v = (jnp.dot(x_b, wv_ref[hn], preferred_element_type=jnp.float32)
                 + bv_ref[hn]).reshape(B, S, HEAD_DIM).astype(jnp.bfloat16)

            # Batched over B: one score matmul / one context matmul per head.
            s = jnp.einsum('bqd,bkd->bqk', q, k,
                           preferred_element_type=jnp.float32) * scale
            s = s + mask_bias                                             # (B, S, S)
            m = jnp.max(s, axis=-1, keepdims=True)
            p = jnp.exp(s - m)
            p = p * pl.reciprocal(jnp.sum(p, axis=-1, keepdims=True), approx=True)
            ctx = jnp.einsum('bqk,bkd->bqd', p.astype(jnp.bfloat16), v,
                             preferred_element_type=jnp.float32)          # (B, S, dh)

            # Concat-over-heads folded into the output projection (accumulate).
            attn = attn + jnp.dot(
                ctx.reshape(B * S, HEAD_DIM).astype(jnp.bfloat16),
                wo_ref[hn], preferred_element_type=jnp.float32)           # (B*S, H)

        # output projection fused with residual-add + LayerNorm
        x = layernorm(attn + x, ln1_g_ref[l], ln1_b_ref[l])

        # ---- FFN (tanh-approx GELU) fused with residual-add + LayerNorm ----
        # NOTE: HF BERT uses erf-GELU; difference < 1e-3 and weights are synthetic.
        ff = jnp.dot(x.astype(jnp.bfloat16), w1_ref[l],
                     preferred_element_type=jnp.float32) + b1_ref[l]
        ff = 0.5 * ff * (1.0 + jnp.tanh(c_gelu * (ff + 0.044715 * ff * ff * ff)))
        ff = jnp.dot(ff.astype(jnp.bfloat16), w2_ref[l],
                     preferred_element_type=jnp.float32) + b2_ref[l]
        x = layernorm(ff + x, ln2_g_ref[l], ln2_b_ref[l])

    # ---- pooler: tanh(W_p @ hidden[CLS] + b_p)  (the `out` of `_, out = self.bert(...)`) ----
    cls = jnp.concatenate([x[b * S:b * S + 1, :] for b in range(B)], axis=0)   # (B, H)
    pooled = jnp.tanh(jnp.dot(cls.astype(jnp.bfloat16), pool_w_ref[...],
                              preferred_element_type=jnp.float32) + pool_b_ref[...])

    # self.drop: dropout is identity in eval mode.
    # TODO(synk): stochastic training-mode dropout (pltpu.prng_*) not implemented.

    # self.fc — single (B, OUTPUT_SIZE) store for the whole batch.
    out_ref[...] = (jnp.dot(pooled.astype(jnp.bfloat16), fc_w_ref[...],
                            preferred_element_type=jnp.float32) + fc_b_ref[...])


# ----------------------------- parameters -------------------------------------
def init_params(key):
    def nrm(k, shape, dtype=jnp.bfloat16):
        return (0.02 * jax.random.normal(k, shape, dtype=jnp.float32)).astype(dtype)

    keys = iter(jax.random.split(key, 16))
    L, H, F, NH, DH = N_LAYERS, HIDDEN, FFN, N_HEADS, HEAD_DIM
    return {
        # embedding tables stay f32 (gather happens in XLA glue, feeds f32 LN)
        "word_emb": nrm(next(keys), (VOCAB, H), jnp.float32),
        "pos_emb": nrm(next(keys), (MAX_POS, H), jnp.float32),
        "type_emb": nrm(next(keys), (TYPE_VOCAB, H), jnp.float32),
        "emb_ln_g": jnp.ones((1, H), jnp.float32),
        "emb_ln_b": jnp.zeros((1, H), jnp.float32),
        # Head-major per-(layer, head) projection weights, bf16 for the MXU.
        "wq": nrm(next(keys), (L * NH, H, DH)),
        "wk": nrm(next(keys), (L * NH, H, DH)),
        "wv": nrm(next(keys), (L * NH, H, DH)),
        "bq": jnp.zeros((L * NH, 1, DH), jnp.float32),
        "bk": jnp.zeros((L * NH, 1, DH), jnp.float32),
        "bv": jnp.zeros((L * NH, 1, DH), jnp.float32),
        "wo": nrm(next(keys), (L * NH, DH, H)),
        "bo": jnp.zeros((L, 1, H), jnp.float32),
        "ln1_g": jnp.ones((L, 1, H), jnp.float32),
        "ln1_b": jnp.zeros((L, 1, H), jnp.float32),
        "w1": nrm(next(keys), (L, H, F)),
        "b1": jnp.zeros((L, 1, F), jnp.float32),
        "w2": nrm(next(keys), (L, F, H)),
        "b2": jnp.zeros((L, 1, H), jnp.float32),
        "ln2_g": jnp.ones((L, 1, H), jnp.float32),
        "ln2_b": jnp.zeros((L, 1, H), jnp.float32),
        "pool_w": nrm(next(keys), (H, H)),
        "pool_b": jnp.zeros((1, H), jnp.float32),
        "fc_w": nrm(next(keys), (H, OUTPUT_SIZE)),   # nn.Linear(768, output_size), scaled down
        "fc_b": jnp.zeros((1, OUTPUT_SIZE), jnp.float32),
    }


# ----------------------------- forward pass ------------------------------------
@jax.jit
def bert_class_forward(params, ids, mask):
    """Equivalent of BERTClass.forward(ids, mask) -> (B, OUTPUT_SIZE) logits."""
    B, S = ids.shape

    # Embedding lookups (gather) stay in plain JAX glue (low-priority to fuse).
    emb = (params["word_emb"][ids]
           + params["pos_emb"][:S][None, :, :]
           + params["type_emb"][0][None, None, :]).astype(jnp.float32)    # (B, S, H)
    emb2 = emb.reshape(B * S, HIDDEN)
    mask_f = mask.astype(jnp.float32)                                     # (B, S)

    weights = (params["emb_ln_g"], params["emb_ln_b"],
               params["wq"], params["wk"], params["wv"],
               params["bq"], params["bk"], params["bv"],
               params["wo"], params["bo"], params["ln1_g"], params["ln1_b"],
               params["w1"], params["b1"], params["w2"], params["b2"],
               params["ln2_g"], params["ln2_b"],
               params["pool_w"], params["pool_b"], params["fc_w"], params["fc_b"])

    # Single grid-less invocation: every operand is a full VMEM-resident block,
    # fetched exactly once; one (B, OUTPUT_SIZE) store at the end.
    out = pl.pallas_call(
        _bert_kernel,
        out_shape=jax.ShapeDtypeStruct((B, OUTPUT_SIZE), jnp.float32),
    )(emb2, mask_f, *weights)

    return out


# ----------------------------- main --------------------------------------------
if __name__ == "__main__":
    key = jax.random.PRNGKey(0)
    k_param, k_ids = jax.random.split(key)

    B, S = 2, 8
    params = init_params(k_param)
    ids = jax.random.randint(k_ids, (B, S), 0, VOCAB, dtype=jnp.int32)
    mask = jnp.array([[1, 1, 1, 1, 1, 1, 1, 1],
                      [1, 1, 1, 1, 1, 1, 0, 0]], dtype=jnp.int32)

    logits = bert_class_forward(params, ids, mask)
    logits = jax.block_until_ready(logits)
    assert logits.shape == (B, OUTPUT_SIZE)
    assert bool(jnp.all(jnp.isfinite(logits)))
    print("KERNEL_OK")
</pallas_src>

<mosaic_0001>
module attributes {stable_mosaic.version = 11 : i64} {
  func.func @_bert_kernel(%arg0: memref<16x32xf32, #tpu.memory_space<vmem>>, %arg1: memref<2x8xf32, #tpu.memory_space<vmem>>, %arg2: memref<1x32xf32, #tpu.memory_space<vmem>>, %arg3: memref<1x32xf32, #tpu.memory_space<vmem>>, %arg4: memref<4x32x16xbf16, #tpu.memory_space<vmem>>, %arg5: memref<4x32x16xbf16, #tpu.memory_space<vmem>>, %arg6: memref<4x32x16xbf16, #tpu.memory_space<vmem>>, %arg7: memref<4x1x16xf32, #tpu.memory_space<vmem>>, %arg8: memref<4x1x16xf32, #tpu.memory_space<vmem>>, %arg9: memref<4x1x16xf32, #tpu.memory_space<vmem>>, %arg10: memref<4x16x32xbf16, #tpu.memory_space<vmem>>, %arg11: memref<2x1x32xf32, #tpu.memory_space<vmem>>, %arg12: memref<2x1x32xf32, #tpu.memory_space<vmem>>, %arg13: memref<2x1x32xf32, #tpu.memory_space<vmem>>, %arg14: memref<2x32x64xbf16, #tpu.memory_space<vmem>>, %arg15: memref<2x1x64xf32, #tpu.memory_space<vmem>>, %arg16: memref<2x64x32xbf16, #tpu.memory_space<vmem>>, %arg17: memref<2x1x32xf32, #tpu.memory_space<vmem>>, %arg18: memref<2x1x32xf32, #tpu.memory_space<vmem>>, %arg19: memref<2x1x32xf32, #tpu.memory_space<vmem>>, %arg20: memref<32x32xbf16, #tpu.memory_space<vmem>>, %arg21: memref<1x32xf32, #tpu.memory_space<vmem>>, %arg22: memref<32x4xbf16, #tpu.memory_space<vmem>>, %arg23: memref<1x4xf32, #tpu.memory_space<vmem>>, %arg24: memref<2x4xf32, #tpu.memory_space<vmem>>) attributes {dimension_semantics = [], scalar_prefetch = 0 : i64, scratch_operands = 0 : i64, tpu.core_type = #tpu.core_type<tc>} {
    %c0 = arith.constant 0 : index
    %c0_0 = arith.constant 0 : index
    %0 = vector.load %arg0[%c0, %c0_0] : memref<16x32xf32, #tpu.memory_space<vmem>>, vector<16x32xf32>
    %c0_1 = arith.constant 0 : index
    %c0_2 = arith.constant 0 : index
    %1 = vector.load %arg2[%c0_1, %c0_2] : memref<1x32xf32, #tpu.memory_space<vmem>>, vector<1x32xf32>
    %c0_3 = arith.constant 0 : index
    %c0_4 = arith.constant 0 : index
    %2 = vector.load %arg3[%c0_3, %c0_4] : memref<1x32xf32, #tpu.memory_space<vmem>>, vector<1x32xf32>
    %cst = arith.constant dense<0.000000e+00> : vector<16xf32>
    %3 = vector.multi_reduction <add>, %0, %cst [1] : vector<16x32xf32> to vector<16xf32>
    %4 = vector.shape_cast %3 : vector<16xf32> to vector<16x1xf32>
    %cst_5 = arith.constant 3.200000e+01 : f32
    %5 = vector.broadcast %cst_5 : f32 to vector<16x1xf32>
    %6 = arith.divf %4, %5 : vector<16x1xf32>
    %7 = vector.broadcast %6 : vector<16x1xf32> to vector<16x32xf32>
    %8 = arith.subf %0, %7 : vector<16x32xf32>
    %9 = arith.mulf %8, %8 : vector<16x32xf32>
    %cst_6 = arith.constant dense<0.000000e+00> : vector<16xf32>
    %10 = vector.multi_reduction <add>, %9, %cst_6 [1] : vector<16x32xf32> to vector<16xf32>
    %11 = vector.shape_cast %10 : vector<16xf32> to vector<16x1xf32>
    %cst_7 = arith.constant 3.200000e+01 : f32
    %12 = vector.broadcast %cst_7 : f32 to vector<16x1xf32>
    %13 = arith.divf %11, %12 : vector<16x1xf32>
    %cst_8 = arith.constant 9.99999996E-13 : f32
    %14 = vector.broadcast %cst_8 : f32 to vector<16x1xf32>
    %15 = arith.addf %13, %14 : vector<16x1xf32>
    %16 = math.rsqrt %15 : vector<16x1xf32>
    %17 = vector.broadcast %16 : vector<16x1xf32> to vector<16x32xf32>
    %18 = arith.mulf %8, %17 : vector<16x32xf32>
    %19 = vector.broadcast %1 : vector<1x32xf32> to vector<16x32xf32>
    %20 = arith.mulf %18, %19 : vector<16x32xf32>
    %21 = vector.broadcast %2 : vector<1x32xf32> to vector<16x32xf32>
    %22 = arith.addf %20, %21 : vector<16x32xf32>
    %c0_9 = arith.constant 0 : index
    %c0_10 = arith.constant 0 : index
    %23 = vector.load %arg1[%c0_9, %c0_10] : memref<2x8xf32, #tpu.memory_space<vmem>>, vector<2x8xf32>
    %cst_11 = arith.constant 1.000000e+00 : f32
    %24 = vector.broadcast %cst_11 : f32 to vector<2x8xf32>
    %25 = arith.subf %24, %23 : vector<2x8xf32>
    %cst_12 = arith.constant -1.000000e+04 : f32
    %26 = vector.broadcast %cst_12 : f32 to vector<2x8xf32>
    %27 = arith.mulf %25, %26 : vector<2x8xf32>
    %28 = vector.shape_cast %27 : vector<2x8xf32> to vector<2x1x8xf32>
    %29 = arith.truncf %22 : vector<16x32xf32> to vector<16x32xbf16>
    %c0_13 = arith.constant 0 : index
    %c0_14 = arith.constant 0 : index
    %c0_15 = arith.constant 0 : index
    %30 = vector.load %arg11[%c0_13, %c0_14, %c0_15] : memref<2x1x32xf32, #tpu.memory_space<vmem>>, vector<1x1x32xf32>
    %31 = vector.shape_cast %30 : vector<1x1x32xf32> to vector<1x32xf32>
    %c0_16 = arith.constant 0 : index
    %c0_17 = arith.constant 0 : index
    %c0_18 = arith.constant 0 : index
    %32 = vector.load %arg4[%c0_16, %c0_17, %c0_18] : memref<4x32x16xbf16, #tpu.memory_space<vmem>>, vector<1x32x16xbf16>
    %33 = vector.shape_cast %32 : vector<1x32x16xbf16> to vector<32x16xbf16>
    %cst_19 = arith.constant dense<0.000000e+00> : vector<16x16xf32>
    %34 = tpu.matmul %29, %33, %cst_19 {dimension_numbers = #tpu.dot_dimension_numbers<[1], [0], [0], [1], [0, 0, 1, 1], [], []>} : vector<16x32xbf16>, vector<32x16xbf16>, vector<16x16xf32> -> vector<16x16xf32>
    %c0_20 = arith.constant 0 : index
    %c0_21 = arith.constant 0 : index
    %c0_22 = arith.constant 0 : index
    %35 = vector.load %arg7[%c0_20, %c0_21, %c0_22] : memref<4x1x16xf32, #tpu.memory_space<vmem>>, vector<1x1x16xf32>
    %36 = vector.shape_cast %35 : vector<1x1x16xf32> to vector<1x16xf32>
    %37 = vector.broadcast %36 : vector<1x16xf32> to vector<16x16xf32>
    %38 = arith.addf %34, %37 : vector<16x16xf32>
    %39 = vector.shape_cast %38 : vector<16x16xf32> to vector<2x8x16xf32>
    %40 = arith.truncf %39 : vector<2x8x16xf32> to vector<2x8x16xbf16>
    %c0_23 = arith.constant 0 : index
    %c0_24 = arith.constant 0 : index
    %c0_25 = arith.constant 0 : index
    %41 = vector.load %arg5[%c0_23, %c0_24, %c0_25] : memref<4x32x16xbf16, #tpu.memory_space<vmem>>, vector<1x32x16xbf16>
    %42 = vector.shape_cast %41 : vector<1x32x16xbf16> to vector<32x16xbf16>
    %cst_26 = arith.constant dense<0.000000e+00> : vector<16x16xf32>
    %43 = tpu.matmul %29, %42, %cst_26 {dimension_numbers = #tpu.dot_dimension_numbers<[1], [0], [0], [1], [0, 0, 1, 1], [], []>} : vector<16x32xbf16>, vector<32x16xbf16>, vector<16x16xf32> -> vector<16x16xf32>
    %c0_27 = arith.constant 0 : index
    %c0_28 = arith.constant 0 : index
    %c0_29 = arith.constant 0 : index
    %44 = vector.load %arg8[%c0_27, %c0_28, %c0_29] : memref<4x1x16xf32, #tpu.memory_space<vmem>>, vector<1x1x16xf32>
    %45 = vector.shape_cast %44 : vector<1x1x16xf32> to vector<1x16xf32>
    %46 = vector.broadcast %45 : vector<1x16xf32> to vector<16x16xf32>
    %47 = arith.addf %43, %46 : vector<16x16xf32>
    %48 = vector.shape_cast %47 : vector<16x16xf32> to vector<2x8x16xf32>
    %49 = arith.truncf %48 : vector<2x8x16xf32> to vector<2x8x16xbf16>
    %c0_30 = arith.constant 0 : index
    %c0_31 = arith.constant 0 : index
    %c0_32 = arith.constant 0 : index
    %50 = vector.load %arg6[%c0_30, %c0_31, %c0_32] : memref<4x32x16xbf16, #tpu.memory_space<vmem>>, vector<1x32x16xbf16>
    %51 = vector.shape_cast %50 : vector<1x32x16xbf16> to vector<32x16xbf16>
    %cst_33 = arith.constant dense<0.000000e+00> : vector<16x16xf32>
    %52 = tpu.matmul %29, %51, %cst_33 {dimension_numbers = #tpu.dot_dimension_numbers<[1], [0], [0], [1], [0, 0, 1, 1], [], []>} : vector<16x32xbf16>, vector<32x16xbf16>, vector<16x16xf32> -> vector<16x16xf32>
    %c0_34 = arith.constant 0 : index
    %c0_35 = arith.constant 0 : index
    %c0_36 = arith.constant 0 : index
    %53 = vector.load %arg9[%c0_34, %c0_35, %c0_36] : memref<4x1x16xf32, #tpu.memory_space<vmem>>, vector<1x1x16xf32>
    %54 = vector.shape_cast %53 : vector<1x1x16xf32> to vector<1x16xf32>
    %55 = vector.broadcast %54 : vector<1x16xf32> to vector<16x16xf32>
    %56 = arith.addf %52, %55 : vector<16x16xf32>
    %57 = vector.shape_cast %56 : vector<16x16xf32> to vector<2x8x16xf32>
    %58 = arith.truncf %57 : vector<2x8x16xf32> to vector<2x8x16xbf16>
    "tpu.trace_start"() <{level = 10 : i32, message = "bqd,bkd->bqk"}> : () -> ()
    %cst_37 = arith.constant dense<0.000000e+00> : vector<2x8x8xf32>
    %59 = tpu.matmul %40, %49, %cst_37 {dimension_numbers = #tpu.dot_dimension_numbers<[2], [2], [1], [1], [0, 0, 0, 1, 1, 1], [0], [0]>} : vector<2x8x16xbf16>, vector<2x8x16xbf16>, vector<2x8x8xf32> -> vector<2x8x8xf32>
    "tpu.trace_stop"() : () -> ()
    %cst_38 = arith.constant 2.500000e-01 : f32
    %60 = vector.broadcast %cst_38 : f32 to vector<2x8x8xf32>
    %61 = arith.mulf %59, %60 : vector<2x8x8xf32>
    %62 = vector.broadcast %28 : vector<2x1x8xf32> to vector<2x8x8xf32>
    %63 = arith.addf %61, %62 : vector<2x8x8xf32>
    %cst_39 = arith.constant dense<0xFF800000> : vector<2x8xf32>
    %64 = vector.multi_reduction <maximumf>, %63, %cst_39 [2] : vector<2x8x8xf32> to vector<2x8xf32>
    %65 = vector.shape_cast %64 : vector<2x8xf32> to vector<2x8x1xf32>
    %66 = vector.broadcast %65 : vector<2x8x1xf32> to vector<2x8x8xf32>
    %67 = arith.subf %63, %66 : vector<2x8x8xf32>
    %68 = math.exp %67 : vector<2x8x8xf32>
    %cst_40 = arith.constant dense<0.000000e+00> : vector<2x8xf32>
    %69 = vector.multi_reduction <add>, %68, %cst_40 [2] : vector<2x8x8xf32> to vector<2x8xf32>
    %70 = vector.shape_cast %69 : vector<2x8xf32> to vector<2x8x1xf32>
    %71 = tpu.reciprocal %70 {approx = true} : vector<2x8x1xf32> -> vector<2x8x1xf32>
    %72 = vector.broadcast %71 : vector<2x8x1xf32> to vector<2x8x8xf32>
    %73 = arith.mulf %68, %72 : vector<2x8x8xf32>
    %74 = arith.truncf %73 : vector<2x8x8xf32> to vector<2x8x8xbf16>
    "tpu.trace_start"() <{level = 10 : i32, message = "bqk,bkd->bqd"}> : () -> ()
    %cst_41 = arith.constant dense<0.000000e+00> : vector<2x8x16xf32>
    %75 = tpu.matmul %74, %58, %cst_41 {dimension_numbers = #tpu.dot_dimension_numbers<[2], [1], [1], [2], [0, 0, 0, 1, 1, 2], [0], [0]>} : vector<2x8x8xbf16>, vector<2x8x16xbf16>, vector<2x8x16xf32> -> vector<2x8x16xf32>
    "tpu.trace_stop"() : () -> ()
    %76 = vector.shape_cast %75 : vector<2x8x16xf32> to vector<16x16xf32>
    %77 = arith.truncf %76 : vector<16x16xf32> to vector<16x16xbf16>
    %c0_42 = arith.constant 0 : index
    %c0_43 = arith.constant 0 : index
    %c0_44 = arith.constant 0 : index
    %78 = vector.load %arg10[%c0_42, %c0_43, %c0_44] : memref<4x16x32xbf16, #tpu.memory_space<vmem>>, vector<1x16x32xbf16>
    %79 = vector.shape_cast %78 : vector<1x16x32xbf16> to vector<16x32xbf16>
    %cst_45 = arith.constant dense<0.000000e+00> : vector<16x32xf32>
    %80 = tpu.matmul %77, %79, %cst_45 {dimension_numbers = #tpu.dot_dimension_numbers<[1], [0], [0], [1], [0, 0, 1, 1], [], []>} : vector<16x16xbf16>, vector<16x32xbf16>, vector<16x32xf32> -> vector<16x32xf32>
    %81 = vector.broadcast %31 : vector<1x32xf32> to vector<16x32xf32>
    %82 = arith.addf %81, %80 : vector<16x32xf32>
    %c1 = arith.constant 1 : index
    %c0_46 = arith.constant 0 : index
    %c0_47 = arith.constant 0 : index
    %83 = vector.load %arg4[%c1, %c0_46, %c0_47] : memref<4x32x16xbf16, #tpu.memory_space<vmem>>, vector<1x32x16xbf16>
    %84 = vector.shape_cast %83 : vector<1x32x16xbf16> to vector<32x16xbf16>
    %cst_48 = arith.constant dense<0.000000e+00> : vector<16x16xf32>
    %85 = tpu.matmul %29, %84, %cst_48 {dimension_numbers = #tpu.dot_dimension_numbers<[1], [0], [0], [1], [0, 0, 1, 1], [], []>} : vector<16x32xbf16>, vector<32x16xbf16>, vector<16x16xf32> -> vector<16x16xf32>
    %c1_49 = arith.constant 1 : index
    %c0_50 = arith.constant 0 : index
    %c0_51 = arith.constant 0 : index
    %86 = vector.load %arg7[%c1_49, %c0_50, %c0_51] : memref<4x1x16xf32, #tpu.memory_space<vmem>>, vector<1x1x16xf32>
    %87 = vector.shape_cast %86 : vector<1x1x16xf32> to vector<1x16xf32>
    %88 = vector.broadcast %87 : vector<1x16xf32> to vector<16x16xf32>
    %89 = arith.addf %85, %88 : vector<16x16xf32>
    %90 = vector.shape_cast %89 : vector<16x16xf32> to vector<2x8x16xf32>
    %91 = arith.truncf %90 : vector<2x8x16xf32> to vector<2x8x16xbf16>
    %c1_52 = arith.constant 1 : index
    %c0_53 = arith.constant 0 : index
    %c0_54 = arith.constant 0 : index
    %92 = vector.load %arg5[%c1_52, %c0_53, %c0_54] : memref<4x32x16xbf16, #tpu.memory_space<vmem>>, vector<1x32x16xbf16>
    %93 = vector.shape_cast %92 : vector<1x32x16xbf16> to vector<32x16xbf16>
    %cst_55 = arith.constant dense<0.000000e+00> : vector<16x16xf32>
    %94 = tpu.matmul %29, %93, %cst_55 {dimension_numbers = #tpu.dot_dimension_numbers<[1], [0], [0], [1], [0, 0, 1, 1], [], []>} : vector<16x32xbf16>, vector<32x16xbf16>, vector<16x16xf32> -> vector<16x16xf32>
    %c1_56 = arith.constant 1 : index
    %c0_57 = arith.constant 0 : index
    %c0_58 = arith.constant 0 : index
    %95 = vector.load %arg8[%c1_56, %c0_57, %c0_58] : memref<4x1x16xf32, #tpu.memory_space<vmem>>, vector<1x1x16xf32>
    %96 = vector.shape_cast %95 : vector<1x1x16xf32> to vector<1x16xf32>
    %97 = vector.broadcast %96 : vector<1x16xf32> to vector<16x16xf32>
    %98 = arith.addf %94, %97 : vector<16x16xf32>
    %99 = vector.shape_cast %98 : vector<16x16xf32> to vector<2x8x16xf32>
    %100 = arith.truncf %99 : vector<2x8x16xf32> to vector<2x8x16xbf16>
    %c1_59 = arith.constant 1 : index
    %c0_60 = arith.constant 0 : index
    %c0_61 = arith.constant 0 : index
    %101 = vector.load %arg6[%c1_59, %c0_60, %c0_61] : memref<4x32x16xbf16, #tpu.memory_space<vmem>>, vector<1x32x16xbf16>
    %102 = vector.shape_cast %101 : vector<1x32x16xbf16> to vector<32x16xbf16>
    %cst_62 = arith.constant dense<0.000000e+00> : vector<16x16xf32>
    %103 = tpu.matmul %29, %102, %cst_62 {dimension_numbers = #tpu.dot_dimension_numbers<[1], [0], [0], [1], [0, 0, 1, 1], [], []>} : vector<16x32xbf16>, vector<32x16xbf16>, vector<16x16xf32> -> vector<16x16xf32>
    %c1_63 = arith.constant 1 : index
    %c0_64 = arith.constant 0 : index
    %c0_65 = arith.constant 0 : index
    %104 = vector.load %arg9[%c1_63, %c0_64, %c0_65] : memref<4x1x16xf32, #tpu.memory_space<vmem>>, vector<1x1x16xf32>
    %105 = vector.shape_cast %104 : vector<1x1x16xf32> to vector<1x16xf32>
    %106 = vector.broadcast %105 : vector<1x16xf32> to vector<16x16xf32>
    %107 = arith.addf %103, %106 : vector<16x16xf32>
    %108 = vector.shape_cast %107 : vector<16x16xf32> to vector<2x8x16xf32>
    %109 = arith.truncf %108 : vector<2x8x16xf32> to vector<2x8x16xbf16>
    "tpu.trace_start"() <{level = 10 : i32, message = "bqd,bkd->bqk"}> : () -> ()
    %cst_66 = arith.constant dense<0.000000e+00> : vector<2x8x8xf32>
    %110 = tpu.matmul %91, %100, %cst_66 {dimension_numbers = #tpu.dot_dimension_numbers<[2], [2], [1], [1], [0, 0, 0, 1, 1, 1], [0], [0]>} : vector<2x8x16xbf16>, vector<2x8x16xbf16>, vector<2x8x8xf32> -> vector<2x8x8xf32>
    "tpu.trace_stop"() : () -> ()
    %cst_67 = arith.constant 2.500000e-01 : f32
    %111 = vector.broadcast %cst_67 : f32 to vector<2x8x8xf32>
    %112 = arith.mulf %110, %111 : vector<2x8x8xf32>
    %113 = vector.broadcast %28 : vector<2x1x8xf32> to vector<2x8x8xf32>
    %114 = arith.addf %112, %113 : vector<2x8x8xf32>
    %cst_68 = arith.constant dense<0xFF800000> : vector<2x8xf32>
    %115 = vector.multi_reduction <maximumf>, %114, %cst_68 [2] : vector<2x8x8xf32> to vector<2x8xf32>
    %116 = vector.shape_cast %115 : vector<2x8xf32> to vector<2x8x1xf32>
    %117 = vector.broadcast %116 : vector<2x8x1xf32> to vector<2x8x8xf32>
    %118 = arith.subf %114, %117 : vector<2x8x8xf32>
    %119 = math.exp %118 : vector<2x8x8xf32>
    %cst_69 = arith.constant dense<0.000000e+00> : vector<2x8xf32>
    %120 = vector.multi_reduction <add>, %119, %cst_69 [2] : vector<2x8x8xf32> to vector<2x8xf32>
    %121 = vector.shape_cast %120 : vector<2x8xf32> to vector<2x8x1xf32>
    %122 = tpu.reciprocal %121 {approx = true} : vector<2x8x1xf32> -> vector<2x8x1xf32>
    %123 = vector.broadcast %122 : vector<2x8x1xf32> to vector<2x8x8xf32>
    %124 = arith.mulf %119, %123 : vector<2x8x8xf32>
    %125 = arith.truncf %124 : vector<2x8x8xf32> to vector<2x8x8xbf16>
    "tpu.trace_start"() <{level = 10 : i32, message = "bqk,bkd->bqd"}> : () -> ()
    %cst_70 = arith.constant dense<0.000000e+00> : vector<2x8x16xf32>
    %126 = tpu.matmul %125, %109, %cst_70 {dimension_numbers = #tpu.dot_dimension_numbers<[2], [1], [1], [2], [0, 0, 0, 1, 1, 2], [0], [0]>} : vector<2x8x8xbf16>, vector<2x8x16xbf16>, vector<2x8x16xf32> -> vector<2x8x16xf32>
    "tpu.trace_stop"() : () -> ()
    %127 = vector.shape_cast %126 : vector<2x8x16xf32> to vector<16x16xf32>
    %128 = arith.truncf %127 : vector<16x16xf32> to vector<16x16xbf16>
    %c1_71 = arith.constant 1 : index
    %c0_72 = arith.constant 0 : index
    %c0_73 = arith.constant 0 : index
    %129 = vector.load %arg10[%c1_71, %c0_72, %c0_73] : memref<4x16x32xbf16, #tpu.memory_space<vmem>>, vector<1x16x32xbf16>
    %130 = vector.shape_cast %129 : vector<1x16x32xbf16> to vector<16x32xbf16>
    %cst_74 = arith.constant dense<0.000000e+00> : vector<16x32xf32>
    %131 = tpu.matmul %128, %130, %cst_74 {dimension_numbers = #tpu.dot_dimension_numbers<[1], [0], [0], [1], [0, 0, 1, 1], [], []>} : vector<16x16xbf16>, vector<16x32xbf16>, vector<16x32xf32> -> vector<16x32xf32>
    %132 = arith.addf %82, %131 : vector<16x32xf32>
    %133 = arith.addf %132, %22 : vector<16x32xf32>
    %c0_75 = arith.constant 0 : index
    %c0_76 = arith.constant 0 : index
    %c0_77 = arith.constant 0 : index
    %134 = vector.load %arg12[%c0_75, %c0_76, %c0_77] : memref<2x1x32xf32, #tpu.memory_space<vmem>>, vector<1x1x32xf32>
    %135 = vector.shape_cast %134 : vector<1x1x32xf32> to vector<1x32xf32>
    %c0_78 = arith.constant 0 : index
    %c0_79 = arith.constant 0 : index
    %c0_80 = arith.constant 0 : index
    %136 = vector.load %arg13[%c0_78, %c0_79, %c0_80] : memref<2x1x32xf32, #tpu.memory_space<vmem>>, vector<1x1x32xf32>
    %137 = vector.shape_cast %136 : vector<1x1x32xf32> to vector<1x32xf32>
    %cst_81 = arith.constant dense<0.000000e+00> : vector<16xf32>
    %138 = vector.multi_reduction <add>, %133, %cst_81 [1] : vector<16x32xf32> to vector<16xf32>
    %139 = vector.shape_cast %138 : vector<16xf32> to vector<16x1xf32>
    %cst_82 = arith.constant 3.200000e+01 : f32
    %140 = vector.broadcast %cst_82 : f32 to vector<16x1xf32>
    %141 = arith.divf %139, %140 : vector<16x1xf32>
    %142 = vector.broadcast %141 : vector<16x1xf32> to vector<16x32xf32>
    %143 = arith.subf %133, %142 : vector<16x32xf32>
    %144 = arith.mulf %143, %143 : vector<16x32xf32>
    %cst_83 = arith.constant dense<0.000000e+00> : vector<16xf32>
    %145 = vector.multi_reduction <add>, %144, %cst_83 [1] : vector<16x32xf32> to vector<16xf32>
    %146 = vector.shape_cast %145 : vector<16xf32> to vector<16x1xf32>
    %cst_84 = arith.constant 3.200000e+01 : f32
    %147 = vector.broadcast %cst_84 : f32 to vector<16x1xf32>
    %148 = arith.divf %146, %147 : vector<16x1xf32>
    %cst_85 = arith.constant 9.99999996E-13 : f32
    %149 = vector.broadcast %cst_85 : f32 to vector<16x1xf32>
    %150 = arith.addf %148, %149 : vector<16x1xf32>
    %151 = math.rsqrt %150 : vector<16x1xf32>
    %152 = vector.broadcast %151 : vector<16x1xf32> to vector<16x32xf32>
    %153 = arith.mulf %143, %152 : vector<16x32xf32>
    %154 = vector.broadcast %135 : vector<1x32xf32> to vector<16x32xf32>
    %155 = arith.mulf %153, %154 : vector<16x32xf32>
    %156 = vector.broadcast %137 : vector<1x32xf32> to vector<16x32xf32>
    %157 = arith.addf %155, %156 : vector<16x32xf32>
    %158 = arith.truncf %157 : vector<16x32xf32> to vector<16x32xbf16>
    %c0_86 = arith.constant 0 : index
    %c0_87 = arith.constant 0 : index
    %c0_88 = arith.constant 0 : index
    %159 = vector.load %arg14[%c0_86, %c0_87, %c0_88] : memref<2x32x64xbf16, #tpu.memory_space<vmem>>, vector<1x32x64xbf16>
    %160 = vector.shape_cast %159 : vector<1x32x64xbf16> to vector<32x64xbf16>
    %cst_89 = arith.constant dense<0.000000e+00> : vector<16x64xf32>
    %161 = tpu.matmul %158, %160, %cst_89 {dimension_numbers = #tpu.dot_dimension_numbers<[1], [0], [0], [1], [0, 0, 1, 1], [], []>} : vector<16x32xbf16>, vector<32x64xbf16>, vector<16x64xf32> -> vector<16x64xf32>
    %c0_90 = arith.constant 0 : index
    %c0_91 = arith.constant 0 : index
    %c0_92 = arith.constant 0 : index
    %162 = vector.load %arg15[%c0_90, %c0_91, %c0_92] : memref<2x1x64xf32, #tpu.memory_space<vmem>>, vector<1x1x64xf32>
    %163 = vector.shape_cast %162 : vector<1x1x64xf32> to vector<1x64xf32>
    %164 = vector.broadcast %163 : vector<1x64xf32> to vector<16x64xf32>
    %165 = arith.addf %161, %164 : vector<16x64xf32>
    %cst_93 = arith.constant 5.000000e-01 : f32
    %166 = vector.broadcast %cst_93 : f32 to vector<16x64xf32>
    %167 = arith.mulf %166, %165 : vector<16x64xf32>
    %cst_94 = arith.constant 4.471500e-02 : f32
    %168 = vector.broadcast %cst_94 : f32 to vector<16x64xf32>
    %169 = arith.mulf %168, %165 : vector<16x64xf32>
    %170 = arith.mulf %169, %165 : vector<16x64xf32>
    %171 = arith.mulf %170, %165 : vector<16x64xf32>
    %172 = arith.addf %165, %171 : vector<16x64xf32>
    %cst_95 = arith.constant 0.797884583 : f32
    %173 = vector.broadcast %cst_95 : f32 to vector<16x64xf32>
    %174 = arith.mulf %173, %172 : vector<16x64xf32>
    %175 = math.tanh %174 : vector<16x64xf32>
    %cst_96 = arith.constant 1.000000e+00 : f32
    %176 = vector.broadcast %cst_96 : f32 to vector<16x64xf32>
    %177 = arith.addf %176, %175 : vector<16x64xf32>
    %178 = arith.mulf %167, %177 : vector<16x64xf32>
    %179 = arith.truncf %178 : vector<16x64xf32> to vector<16x64xbf16>
    %c0_97 = arith.constant 0 : index
    %c0_98 = arith.constant 0 : index
    %c0_99 = arith.constant 0 : index
    %180 = vector.load %arg16[%c0_97, %c0_98, %c0_99] : memref<2x64x32xbf16, #tpu.memory_space<vmem>>, vector<1x64x32xbf16>
    %181 = vector.shape_cast %180 : vector<1x64x32xbf16> to vector<64x32xbf16>
    %cst_100 = arith.constant dense<0.000000e+00> : vector<16x32xf32>
    %182 = tpu.matmul %179, %181, %cst_100 {dimension_numbers = #tpu.dot_dimension_numbers<[1], [0], [0], [1], [0, 0, 1, 1], [], []>} : vector<16x64xbf16>, vector<64x32xbf16>, vector<16x32xf32> -> vector<16x32xf32>
    %c0_101 = arith.constant 0 : index
    %c0_102 = arith.constant 0 : index
    %c0_103 = arith.constant 0 : index
    %183 = vector.load %arg17[%c0_101, %c0_102, %c0_103] : memref<2x1x32xf32, #tpu.memory_space<vmem>>, vector<1x1x32xf32>
    %184 = vector.shape_cast %183 : vector<1x1x32xf32> to vector<1x32xf32>
    %185 = vector.broadcast %184 : vector<1x32xf32> to vector<16x32xf32>
    %186 = arith.addf %182, %185 : vector<16x32xf32>
    %187 = arith.addf %186, %157 : vector<16x32xf32>
    %c0_104 = arith.constant 0 : index
    %c0_105 = arith.constant 0 : index
    %c0_106 = arith.constant 0 : index
    %188 = vector.load %arg18[%c0_104, %c0_105, %c0_106] : memref<2x1x32xf32, #tpu.memory_space<vmem>>, vector<1x1x32xf32>
    %189 = vector.shape_cast %188 : vector<1x1x32xf32> to vector<1x32xf32>
    %c0_107 = arith.constant 0 : index
    %c0_108 = arith.constant 0 : index
    %c0_109 = arith.constant 0 : index
    %190 = vector.load %arg19[%c0_107, %c0_108, %c0_109] : memref<2x1x32xf32, #tpu.memory_space<vmem>>, vector<1x1x32xf32>
    %191 = vector.shape_cast %190 : vector<1x1x32xf32> to vector<1x32xf32>
    %cst_110 = arith.constant dense<0.000000e+00> : vector<16xf32>
    %192 = vector.multi_reduction <add>, %187, %cst_110 [1] : vector<16x32xf32> to vector<16xf32>
    %193 = vector.shape_cast %192 : vector<16xf32> to vector<16x1xf32>
    %cst_111 = arith.constant 3.200000e+01 : f32
    %194 = vector.broadcast %cst_111 : f32 to vector<16x1xf32>
    %195 = arith.divf %193, %194 : vector<16x1xf32>
    %196 = vector.broadcast %195 : vector<16x1xf32> to vector<16x32xf32>
    %197 = arith.subf %187, %196 : vector<16x32xf32>
    %198 = arith.mulf %197, %197 : vector<16x32xf32>
    %cst_112 = arith.constant dense<0.000000e+00> : vector<16xf32>
    %199 = vector.multi_reduction <add>, %198, %cst_112 [1] : vector<16x32xf32> to vector<16xf32>
    %200 = vector.shape_cast %199 : vector<16xf32> to vector<16x1xf32>
    %cst_113 = arith.constant 3.200000e+01 : f32
    %201 = vector.broadcast %cst_113 : f32 to vector<16x1xf32>
    %202 = arith.divf %200, %201 : vector<16x1xf32>
    %cst_114 = arith.constant 9.99999996E-13 : f32
    %203 = vector.broadcast %cst_114 : f32 to vector<16x1xf32>
    %204 = arith.addf %202, %203 : vector<16x1xf32>
    %205 = math.rsqrt %204 : vector<16x1xf32>
    %206 = vector.broadcast %205 : vector<16x1xf32> to vector<16x32xf32>
    %207 = arith.mulf %197, %206 : vector<16x32xf32>
    %208 = vector.broadcast %189 : vector<1x32xf32> to vector<16x32xf32>
    %209 = arith.mulf %207, %208 : vector<16x32xf32>
    %210 = vector.broadcast %191 : vector<1x32xf32> to vector<16x32xf32>
    %211 = arith.addf %209, %210 : vector<16x32xf32>
    %212 = arith.truncf %211 : vector<16x32xf32> to vector<16x32xbf16>
    %c1_115 = arith.constant 1 : index
    %c0_116 = arith.constant 0 : index
    %c0_117 = arith.constant 0 : index
    %213 = vector.load %arg11[%c1_115, %c0_116, %c0_117] : memref<2x1x32xf32, #tpu.memory_space<vmem>>, vector<1x1x32xf32>
    %214 = vector.shape_cast %213 : vector<1x1x32xf32> to vector<1x32xf32>
    %c2 = arith.constant 2 : index
    %c0_118 = arith.constant 0 : index
    %c0_119 = arith.constant 0 : index
    %215 = vector.load %arg4[%c2, %c0_118, %c0_119] : memref<4x32x16xbf16, #tpu.memory_space<vmem>>, vector<1x32x16xbf16>
    %216 = vector.shape_cast %215 : vector<1x32x16xbf16> to vector<32x16xbf16>
    %cst_120 = arith.constant dense<0.000000e+00> : vector<16x16xf32>
    %217 = tpu.matmul %212, %216, %cst_120 {dimension_numbers = #tpu.dot_dimension_numbers<[1], [0], [0], [1], [0, 0, 1, 1], [], []>} : vector<16x32xbf16>, vector<32x16xbf16>, vector<16x16xf32> -> vector<16x16xf32>
    %c2_121 = arith.constant 2 : index
    %c0_122 = arith.constant 0 : index
    %c0_123 = arith.constant 0 : index
    %218 = vector.load %arg7[%c2_121, %c0_122, %c0_123] : memref<4x1x16xf32, #tpu.memory_space<vmem>>, vector<1x1x16xf32>
    %219 = vector.shape_cast %218 : vector<1x1x16xf32> to vector<1x16xf32>
    %220 = vector.broadcast %219 : vector<1x16xf32> to vector<16x16xf32>
    %221 = arith.addf %217, %220 : vector<16x16xf32>
    %222 = vector.shape_cast %221 : vector<16x16xf32> to vector<2x8x16xf32>
    %223 = arith.truncf %222 : vector<2x8x16xf32> to vector<2x8x16xbf16>
    %c2_124 = arith.constant 2 : index
    %c0_125 = arith.constant 0 : index
    %c0_126 = arith.constant 0 : index
    %224 = vector.load %arg5[%c2_124, %c0_125, %c0_126] : memref<4x32x16xbf16, #tpu.memory_space<vmem>>, vector<1x32x16xbf16>
    %225 = vector.shape_cast %224 : vector<1x32x16xbf16> to vector<32x16xbf16>
    %cst_127 = arith.constant dense<0.000000e+00> : vector<16x16xf32>
    %226 = tpu.matmul %212, %225, %cst_127 {dimension_numbers = #tpu.dot_dimension_numbers<[1], [0], [0], [1], [0, 0, 1, 1], [], []>} : vector<16x32xbf16>, vector<32x16xbf16>, vector<16x16xf32> -> vector<16x16xf32>
    %c2_128 = arith.constant 2 : index
    %c0_129 = arith.constant 0 : index
    %c0_130 = arith.constant 0 : index
    %227 = vector.load %arg8[%c2_128, %c0_129, %c0_130] : memref<4x1x16xf32, #tpu.memory_space<vmem>>, vector<1x1x16xf32>
    %228 = vector.shape_cast %227 : vector<1x1x16xf32> to vector<1x16xf32>
    %229 = vector.broadcast %228 : vector<1x16xf32> to vector<16x16xf32>
    %230 = arith.addf %226, %229 : vector<16x16xf32>
    %231 = vector.shape_cast %230 : vector<16x16xf32> to vector<2x8x16xf32>
    %232 = arith.truncf %231 : vector<2x8x16xf32> to vector<2x8x16xbf16>
    %c2_131 = arith.constant 2 : index
    %c0_132 = arith.constant 0 : index
    %c0_133 = arith.constant 0 : index
    %233 = vector.load %arg6[%c2_131, %c0_132, %c0_133] : memref<4x32x16xbf16, #tpu.memory_space<vmem>>, vector<1x32x16xbf16>
    %234 = vector.shape_cast %233 : vector<1x32x16xbf16> to vector<32x16xbf16>
    %cst_134 = arith.constant dense<0.000000e+00> : vector<16x16xf32>
    %235 = tpu.matmul %212, %234, %cst_134 {dimension_numbers = #tpu.dot_dimension_numbers<[1], [0], [0], [1], [0, 0, 1, 1], [], []>} : vector<16x32xbf16>, vector<32x16xbf16>, vector<16x16xf32> -> vector<16x16xf32>
    %c2_135 = arith.constant 2 : index
    %c0_136 = arith.constant 0 : index
    %c0_137 = arith.constant 0 : index
    %236 = vector.load %arg9[%c2_135, %c0_136, %c0_137] : memref<4x1x16xf32, #tpu.memory_space<vmem>>, vector<1x1x16xf32>
    %237 = vector.shape_cast %236 : vector<1x1x16xf32> to vector<1x16xf32>
    %238 = vector.broadcast %237 : vector<1x16xf32> to vector<16x16xf32>
    %239 = arith.addf %235, %238 : vector<16x16xf32>
    %240 = vector.shape_cast %239 : vector<16x16xf32> to vector<2x8x16xf32>
    %241 = arith.truncf %240 : vector<2x8x16xf32> to vector<2x8x16xbf16>
    "tpu.trace_start"() <{level = 10 : i32, message = "bqd,bkd->bqk"}> : () -> ()
    %cst_138 = arith.constant dense<0.000000e+00> : vector<2x8x8xf32>
    %242 = tpu.matmul %223, %232, %cst_138 {dimension_numbers = #tpu.dot_dimension_numbers<[2], [2], [1], [1], [0, 0, 0, 1, 1, 1], [0], [0]>} : vector<2x8x16xbf16>, vector<2x8x16xbf16>, vector<2x8x8xf32> -> vector<2x8x8xf32>
    "tpu.trace_stop"() : () -> ()
    %cst_139 = arith.constant 2.500000e-01 : f32
    %243 = vector.broadcast %cst_139 : f32 to vector<2x8x8xf32>
    %244 = arith.mulf %242, %243 : vector<2x8x8xf32>
    %245 = vector.broadcast %28 : vector<2x1x8xf32> to vector<2x8x8xf32>
    %246 = arith.addf %244, %245 : vector<2x8x8xf32>
    %cst_140 = arith.constant dense<0xFF800000> : vector<2x8xf32>
    %247 = vector.multi_reduction <maximumf>, %246, %cst_140 [2] : vector<2x8x8xf32> to vector<2x8xf32>
    %248 = vector.shape_cast %247 : vector<2x8xf32> to vector<2x8x1xf32>
    %249 = vector.broadcast %248 : vector<2x8x1xf32> to vector<2x8x8xf32>
    %250 = arith.subf %246, %249 : vector<2x8x8xf32>
    %251 = math.exp %250 : vector<2x8x8xf32>
    %cst_141 = arith.constant dense<0.000000e+00> : vector<2x8xf32>
    %252 = vector.multi_reduction <add>, %251, %cst_141 [2] : vector<2x8x8xf32> to vector<2x8xf32>
    %253 = vector.shape_cast %252 : vector<2x8xf32> to vector<2x8x1xf32>
    %254 = tpu.reciprocal %253 {approx = true} : vector<2x8x1xf32> -> vector<2x8x1xf32>
    %255 = vector.broadcast %254 : vector<2x8x1xf32> to vector<2x8x8xf32>
    %256 = arith.mulf %251, %255 : vector<2x8x8xf32>
    %257 = arith.truncf %256 : vector<2x8x8xf32> to vector<2x8x8xbf16>
    "tpu.trace_start"() <{level = 10 : i32, message = "bqk,bkd->bqd"}> : () -> ()
    %cst_142 = arith.constant dense<0.000000e+00> : vector<2x8x16xf32>
    %258 = tpu.matmul %257, %241, %cst_142 {dimension_numbers = #tpu.dot_dimension_numbers<[2], [1], [1], [2], [0, 0, 0, 1, 1, 2], [0], [0]>} : vector<2x8x8xbf16>, vector<2x8x16xbf16>, vector<2x8x16xf32> -> vector<2x8x16xf32>
    "tpu.trace_stop"() : () -> ()
    %259 = vector.shape_cast %258 : vector<2x8x16xf32> to vector<16x16xf32>
    %260 = arith.truncf %259 : vector<16x16xf32> to vector<16x16xbf16>
    %c2_143 = arith.constant 2 : index
    %c0_144 = arith.constant 0 : index
    %c0_145 = arith.constant 0 : index
    %261 = vector.load %arg10[%c2_143, %c0_144, %c0_145] : memref<4x16x32xbf16, #tpu.memory_space<vmem>>, vector<1x16x32xbf16>
    %262 = vector.shape_cast %261 : vector<1x16x32xbf16> to vector<16x32xbf16>
    %cst_146 = arith.constant dense<0.000000e+00> : vector<16x32xf32>
    %263 = tpu.matmul %260, %262, %cst_146 {dimension_numbers = #tpu.dot_dimension_numbers<[1], [0], [0], [1], [0, 0, 1, 1], [], []>} : vector<16x16xbf16>, vector<16x32xbf16>, vector<16x32xf32> -> vector<16x32xf32>
    %264 = vector.broadcast %214 : vector<1x32xf32> to vector<16x32xf32>
    %265 = arith.addf %264, %263 : vector<16x32xf32>
    %c3 = arith.constant 3 : index
    %c0_147 = arith.constant 0 : index
    %c0_148 = arith.constant 0 : index
    %266 = vector.load %arg4[%c3, %c0_147, %c0_148] : memref<4x32x16xbf16, #tpu.memory_space<vmem>>, vector<1x32x16xbf16>
    %267 = vector.shape_cast %266 : vector<1x32x16xbf16> to vector<32x16xbf16>
    %cst_149 = arith.constant dense<0.000000e+00> : vector<16x16xf32>
    %268 = tpu.matmul %212, %267, %cst_149 {dimension_numbers = #tpu.dot_dimension_numbers<[1], [0], [0], [1], [0, 0, 1, 1], [], []>} : vector<16x32xbf16>, vector<32x16xbf16>, vector<16x16xf32> -> vector<16x16xf32>
    %c3_150 = arith.constant 3 : index
    %c0_151 = arith.constant 0 : index
    %c0_152 = arith.constant 0 : index
    %269 = vector.load %arg7[%c3_150, %c0_151, %c0_152] : memref<4x1x16xf32, #tpu.memory_space<vmem>>, vector<1x1x16xf32>
    %270 = vector.shape_cast %269 : vector<1x1x16xf32> to vector<1x16xf32>
    %271 = vector.broadcast %270 : vector<1x16xf32> to vector<16x16xf32>
    %272 = arith.addf %268, %271 : vector<16x16xf32>
    %273 = vector.shape_cast %272 : vector<16x16xf32> to vector<2x8x16xf32>
    %274 = arith.truncf %273 : vector<2x8x16xf32> to vector<2x8x16xbf16>
    %c3_153 = arith.constant 3 : index
    %c0_154 = arith.constant 0 : index
    %c0_155 = arith.constant 0 : index
    %275 = vector.load %arg5[%c3_153, %c0_154, %c0_155] : memref<4x32x16xbf16, #tpu.memory_space<vmem>>, vector<1x32x16xbf16>
    %276 = vector.shape_cast %275 : vector<1x32x16xbf16> to vector<32x16xbf16>
    %cst_156 = arith.constant dense<0.000000e+00> : vector<16x16xf32>
    %277 = tpu.matmul %212, %276, %cst_156 {dimension_numbers = #tpu.dot_dimension_numbers<[1], [0], [0], [1], [0, 0, 1, 1], [], []>} : vector<16x32xbf16>, vector<32x16xbf16>, vector<16x16xf32> -> vector<16x16xf32>
    %c3_157 = arith.constant 3 : index
    %c0_158 = arith.constant 0 : index
    %c0_159 = arith.constant 0 : index
    %278 = vector.load %arg8[%c3_157, %c0_158, %c0_159] : memref<4x1x16xf32, #tpu.memory_space<vmem>>, vector<1x1x16xf32>
    %279 = vector.shape_cast %278 : vector<1x1x16xf32> to vector<1x16xf32>
    %280 = vector.broadcast %279 : vector<1x16xf32> to vector<16x16xf32>
    %281 = arith.addf %277, %280 : vector<16x16xf32>
    %282 = vector.shape_cast %281 : vector<16x16xf32> to vector<2x8x16xf32>
    %283 = arith.truncf %282 : vector<2x8x16xf32> to vector<2x8x16xbf16>
    %c3_160 = arith.constant 3 : index
    %c0_161 = arith.constant 0 : index
    %c0_162 = arith.constant 0 : index
    %284 = vector.load %arg6[%c3_160, %c0_161, %c0_162] : memref<4x32x16xbf16, #tpu.memory_space<vmem>>, vector<1x32x16xbf16>
    %285 = vector.shape_cast %284 : vector<1x32x16xbf16> to vector<32x16xbf16>
    %cst_163 = arith.constant dense<0.000000e+00> : vector<16x16xf32>
    %286 = tpu.matmul %212, %285, %cst_163 {dimension_numbers = #tpu.dot_dimension_numbers<[1], [0], [0], [1], [0, 0, 1, 1], [], []>} : vector<16x32xbf16>, vector<32x16xbf16>, vector<16x16xf32> -> vector<16x16xf32>
    %c3_164 = arith.constant 3 : index
    %c0_165 = arith.constant 0 : index
    %c0_166 = arith.constant 0 : index
    %287 = vector.load %arg9[%c3_164, %c0_165, %c0_166] : memref<4x1x16xf32, #tpu.memory_space<vmem>>, vector<1x1x16xf32>
    %288 = vector.shape_cast %287 : vector<1x1x16xf32> to vector<1x16xf32>
    %289 = vector.broadcast %288 : vector<1x16xf32> to vector<16x16xf32>
    %290 = arith.addf %286, %289 : vector<16x16xf32>
    %291 = vector.shape_cast %290 : vector<16x16xf32> to vector<2x8x16xf32>
    %292 = arith.truncf %291 : vector<2x8x16xf32> to vector<2x8x16xbf16>
    "tpu.trace_start"() <{level = 10 : i32, message = "bqd,bkd->bqk"}> : () -> ()
    %cst_167 = arith.constant dense<0.000000e+00> : vector<2x8x8xf32>
    %293 = tpu.matmul %274, %283, %cst_167 {dimension_numbers = #tpu.dot_dimension_numbers<[2], [2], [1], [1], [0, 0, 0, 1, 1, 1], [0], [0]>} : vector<2x8x16xbf16>, vector<2x8x16xbf16>, vector<2x8x8xf32> -> vector<2x8x8xf32>
    "tpu.trace_stop"() : () -> ()
    %cst_168 = arith.constant 2.500000e-01 : f32
    %294 = vector.broadcast %cst_168 : f32 to vector<2x8x8xf32>
    %295 = arith.mulf %293, %294 : vector<2x8x8xf32>
    %296 = vector.broadcast %28 : vector<2x1x8xf32> to vector<2x8x8xf32>
    %297 = arith.addf %295, %296 : vector<2x8x8xf32>
    %cst_169 = arith.constant dense<0xFF800000> : vector<2x8xf32>
    %298 = vector.multi_reduction <maximumf>, %297, %cst_169 [2] : vector<2x8x8xf32> to vector<2x8xf32>
    %299 = vector.shape_cast %298 : vector<2x8xf32> to vector<2x8x1xf32>
    %300 = vector.broadcast %299 : vector<2x8x1xf32> to vector<2x8x8xf32>
    %301 = arith.subf %297, %300 : vector<2x8x8xf32>
    %302 = math.exp %301 : vector<2x8x8xf32>
    %cst_170 = arith.constant dense<0.000000e+00> : vector<2x8xf32>
    %303 = vector.multi_reduction <add>, %302, %cst_170 [2] : vector<2x8x8xf32> to vector<2x8xf32>
    %304 = vector.shape_cast %303 : vector<2x8xf32> to vector<2x8x1xf32>
    %305 = tpu.reciprocal %304 {approx = true} : vector<2x8x1xf32> -> vector<2x8x1xf32>
    %306 = vector.broadcast %305 : vector<2x8x1xf32> to vector<2x8x8xf32>
    %307 = arith.mulf %302, %306 : vector<2x8x8xf32>
    %308 = arith.truncf %307 : vector<2x8x8xf32> to vector<2x8x8xbf16>
    "tpu.trace_start"() <{level = 10 : i32, message = "bqk,bkd->bqd"}> : () -> ()
    %cst_171 = arith.constant dense<0.000000e+00> : vector<2x8x16xf32>
    %309 = tpu.matmul %308, %292, %cst_171 {dimension_numbers = #tpu.dot_dimension_numbers<[2], [1], [1], [2], [0, 0, 0, 1, 1, 2], [0], [0]>} : vector<2x8x8xbf16>, vector<2x8x16xbf16>, vector<2x8x16xf32> -> vector<2x8x16xf32>
    "tpu.trace_stop"() : () -> ()
    %310 = vector.shape_cast %309 : vector<2x8x16xf32> to vector<16x16xf32>
    %311 = arith.truncf %310 : vector<16x16xf32> to vector<16x16xbf16>
    %c3_172 = arith.constant 3 : index
    %c0_173 = arith.constant 0 : index
    %c0_174 = arith.constant 0 : index
    %312 = vector.load %arg10[%c3_172, %c0_173, %c0_174] : memref<4x16x32xbf16, #tpu.memory_space<vmem>>, vector<1x16x32xbf16>
    %313 = vector.shape_cast %312 : vector<1x16x32xbf16> to vector<16x32xbf16>
    %cst_175 = arith.constant dense<0.000000e+00> : vector<16x32xf32>
    %314 = tpu.matmul %311, %313, %cst_175 {dimension_numbers = #tpu.dot_dimension_numbers<[1], [0], [0], [1], [0, 0, 1, 1], [], []>} : vector<16x16xbf16>, vector<16x32xbf16>, vector<16x32xf32> -> vector<16x32xf32>
    %315 = arith.addf %265, %314 : vector<16x32xf32>
    %316 = arith.addf %315, %211 : vector<16x32xf32>
    %c1_176 = arith.constant 1 : index
    %c0_177 = arith.constant 0 : index
    %c0_178 = arith.constant 0 : index
    %317 = vector.load %arg12[%c1_176, %c0_177, %c0_178] : memref<2x1x32xf32, #tpu.memory_space<vmem>>, vector<1x1x32xf32>
    %318 = vector.shape_cast %317 : vector<1x1x32xf32> to vector<1x32xf32>
    %c1_179 = arith.constant 1 : index
    %c0_180 = arith.constant 0 : index
    %c0_181 = arith.constant 0 : index
    %319 = vector.load %arg13[%c1_179, %c0_180, %c0_181] : memref<2x1x32xf32, #tpu.memory_space<vmem>>, vector<1x1x32xf32>
    %320 = vector.shape_cast %319 : vector<1x1x32xf32> to vector<1x32xf32>
    %cst_182 = arith.constant dense<0.000000e+00> : vector<16xf32>
    %321 = vector.multi_reduction <add>, %316, %cst_182 [1] : vector<16x32xf32> to vector<16xf32>
    %322 = vector.shape_cast %321 : vector<16xf32> to vector<16x1xf32>
    %cst_183 = arith.constant 3.200000e+01 : f32
    %323 = vector.broadcast %cst_183 : f32 to vector<16x1xf32>
    %324 = arith.divf %322, %323 : vector<16x1xf32>
    %325 = vector.broadcast %324 : vector<16x1xf32> to vector<16x32xf32>
    %326 = arith.subf %316, %325 : vector<16x32xf32>
    %327 = arith.mulf %326, %326 : vector<16x32xf32>
    %cst_184 = arith.constant dense<0.000000e+00> : vector<16xf32>
    %328 = vector.multi_reduction <add>, %327, %cst_184 [1] : vector<16x32xf32> to vector<16xf32>
    %329 = vector.shape_cast %328 : vector<16xf32> to vector<16x1xf32>
    %cst_185 = arith.constant 3.200000e+01 : f32
    %330 = vector.broadcast %cst_185 : f32 to vector<16x1xf32>
    %331 = arith.divf %329, %330 : vector<16x1xf32>
    %cst_186 = arith.constant 9.99999996E-13 : f32
    %332 = vector.broadcast %cst_186 : f32 to vector<16x1xf32>
    %333 = arith.addf %331, %332 : vector<16x1xf32>
    %334 = math.rsqrt %333 : vector<16x1xf32>
    %335 = vector.broadcast %334 : vector<16x1xf32> to vector<16x32xf32>
    %336 = arith.mulf %326, %335 : vector<16x32xf32>
    %337 = vector.broadcast %318 : vector<1x32xf32> to vector<16x32xf32>
    %338 = arith.mulf %336, %337 : vector<16x32xf32>
    %339 = vector.broadcast %320 : vector<1x32xf32> to vector<16x32xf32>
    %340 = arith.addf %338, %339 : vector<16x32xf32>
    %341 = arith.truncf %340 : vector<16x32xf32> to vector<16x32xbf16>
    %c1_187 = arith.constant 1 : index
    %c0_188 = arith.constant 0 : index
    %c0_189 = arith.constant 0 : index
    %342 = vector.load %arg14[%c1_187, %c0_188, %c0_189] : memref<2x32x64xbf16, #tpu.memory_space<vmem>>, vector<1x32x64xbf16>
    %343 = vector.shape_cast %342 : vector<1x32x64xbf16> to vector<32x64xbf16>
    %cst_190 = arith.constant dense<0.000000e+00> : vector<16x64xf32>
    %344 = tpu.matmul %341, %343, %cst_190 {dimension_numbers = #tpu.dot_dimension_numbers<[1], [0], [0], [1], [0, 0, 1, 1], [], []>} : vector<16x32xbf16>, vector<32x64xbf16>, vector<16x64xf32> -> vector<16x64xf32>
    %c1_191 = arith.constant 1 : index
    %c0_192 = arith.constant 0 : index
    %c0_193 = arith.constant 0 : index
    %345 = vector.load %arg15[%c1_191, %c0_192, %c0_193] : memref<2x1x64xf32, #tpu.memory_space<vmem>>, vector<1x1x64xf32>
    %346 = vector.shape_cast %345 : vector<1x1x64xf32> to vector<1x64xf32>
    %347 = vector.broadcast %346 : vector<1x64xf32> to vector<16x64xf32>
    %348 = arith.addf %344, %347 : vector<16x64xf32>
    %cst_194 = arith.constant 5.000000e-01 : f32
    %349 = vector.broadcast %cst_194 : f32 to vector<16x64xf32>
    %350 = arith.mulf %349, %348 : vector<16x64xf32>
    %cst_195 = arith.constant 4.471500e-02 : f32
    %351 = vector.broadcast %cst_195 : f32 to vector<16x64xf32>
    %352 = arith.mulf %351, %348 : vector<16x64xf32>
    %353 = arith.mulf %352, %348 : vector<16x64xf32>
    %354 = arith.mulf %353, %348 : vector<16x64xf32>
    %355 = arith.addf %348, %354 : vector<16x64xf32>
    %cst_196 = arith.constant 0.797884583 : f32
    %356 = vector.broadcast %cst_196 : f32 to vector<16x64xf32>
    %357 = arith.mulf %356, %355 : vector<16x64xf32>
    %358 = math.tanh %357 : vector<16x64xf32>
    %cst_197 = arith.constant 1.000000e+00 : f32
    %359 = vector.broadcast %cst_197 : f32 to vector<16x64xf32>
    %360 = arith.addf %359, %358 : vector<16x64xf32>
    %361 = arith.mulf %350, %360 : vector<16x64xf32>
    %362 = arith.truncf %361 : vector<16x64xf32> to vector<16x64xbf16>
    %c1_198 = arith.constant 1 : index
    %c0_199 = arith.constant 0 : index
    %c0_200 = arith.constant 0 : index
    %363 = vector.load %arg16[%c1_198, %c0_199, %c0_200] : memref<2x64x32xbf16, #tpu.memory_space<vmem>>, vector<1x64x32xbf16>
    %364 = vector.shape_cast %363 : vector<1x64x32xbf16> to vector<64x32xbf16>
    %cst_201 = arith.constant dense<0.000000e+00> : vector<16x32xf32>
    %365 = tpu.matmul %362, %364, %cst_201 {dimension_numbers = #tpu.dot_dimension_numbers<[1], [0], [0], [1], [0, 0, 1, 1], [], []>} : vector<16x64xbf16>, vector<64x32xbf16>, vector<16x32xf32> -> vector<16x32xf32>
    %c1_202 = arith.constant 1 : index
    %c0_203 = arith.constant 0 : index
    %c0_204 = arith.constant 0 : index
    %366 = vector.load %arg17[%c1_202, %c0_203, %c0_204] : memref<2x1x32xf32, #tpu.memory_space<vmem>>, vector<1x1x32xf32>
    %367 = vector.shape_cast %366 : vector<1x1x32xf32> to vector<1x32xf32>
    %368 = vector.broadcast %367 : vector<1x32xf32> to vector<16x32xf32>
    %369 = arith.addf %365, %368 : vector<16x32xf32>
    %370 = arith.addf %369, %340 : vector<16x32xf32>
    %c1_205 = arith.constant 1 : index
    %c0_206 = arith.constant 0 : index
    %c0_207 = arith.constant 0 : index
    %371 = vector.load %arg18[%c1_205, %c0_206, %c0_207] : memref<2x1x32xf32, #tpu.memory_space<vmem>>, vector<1x1x32xf32>
    %372 = vector.shape_cast %371 : vector<1x1x32xf32> to vector<1x32xf32>
    %c1_208 = arith.constant 1 : index
    %c0_209 = arith.constant 0 : index
    %c0_210 = arith.constant 0 : index
    %373 = vector.load %arg19[%c1_208, %c0_209, %c0_210] : memref<2x1x32xf32, #tpu.memory_space<vmem>>, vector<1x1x32xf32>
    %374 = vector.shape_cast %373 : vector<1x1x32xf32> to vector<1x32xf32>
    %cst_211 = arith.constant dense<0.000000e+00> : vector<16xf32>
    %375 = vector.multi_reduction <add>, %370, %cst_211 [1] : vector<16x32xf32> to vector<16xf32>
    %376 = vector.shape_cast %375 : vector<16xf32> to vector<16x1xf32>
    %cst_212 = arith.constant 3.200000e+01 : f32
    %377 = vector.broadcast %cst_212 : f32 to vector<16x1xf32>
    %378 = arith.divf %376, %377 : vector<16x1xf32>
    %379 = vector.broadcast %378 : vector<16x1xf32> to vector<16x32xf32>
    %380 = arith.subf %370, %379 : vector<16x32xf32>
    %381 = arith.mulf %380, %380 : vector<16x32xf32>
    %cst_213 = arith.constant dense<0.000000e+00> : vector<16xf32>
    %382 = vector.multi_reduction <add>, %381, %cst_213 [1] : vector<16x32xf32> to vector<16xf32>
    %383 = vector.shape_cast %382 : vector<16xf32> to vector<16x1xf32>
    %cst_214 = arith.constant 3.200000e+01 : f32
    %384 = vector.broadcast %cst_214 : f32 to vector<16x1xf32>
    %385 = arith.divf %383, %384 : vector<16x1xf32>
    %cst_215 = arith.constant 9.99999996E-13 : f32
    %386 = vector.broadcast %cst_215 : f32 to vector<16x1xf32>
    %387 = arith.addf %385, %386 : vector<16x1xf32>
    %388 = math.rsqrt %387 : vector<16x1xf32>
    %389 = vector.broadcast %388 : vector<16x1xf32> to vector<16x32xf32>
    %390 = arith.mulf %380, %389 : vector<16x32xf32>
    %391 = vector.broadcast %372 : vector<1x32xf32> to vector<16x32xf32>
    %392 = arith.mulf %390, %391 : vector<16x32xf32>
    %393 = vector.broadcast %374 : vector<1x32xf32> to vector<16x32xf32>
    %394 = arith.addf %392, %393 : vector<16x32xf32>
    %395 = vector.extract_strided_slice %394 {offsets = [0, 0], sizes = [1, 32], strides = [1, 1]} : vector<16x32xf32> to vector<1x32xf32>
    %396 = vector.extract_strided_slice %394 {offsets = [8, 0], sizes = [1, 32], strides = [1, 1]} : vector<16x32xf32> to vector<1x32xf32>
    %397 = tpu.concatenate %395, %396 in 0 : vector<1x32xf32>, vector<1x32xf32> -> vector<2x32xf32>
    %398 = arith.truncf %397 : vector<2x32xf32> to vector<2x32xbf16>
    %c0_216 = arith.constant 0 : index
    %c0_217 = arith.constant 0 : index
    %399 = vector.load %arg20[%c0_216, %c0_217] : memref<32x32xbf16, #tpu.memory_space<vmem>>, vector<32x32xbf16>
    %cst_218 = arith.constant dense<0.000000e+00> : vector<2x32xf32>
    %400 = tpu.matmul %398, %399, %cst_218 {dimension_numbers = #tpu.dot_dimension_numbers<[1], [0], [0], [1], [0, 0, 1, 1], [], []>} : vector<2x32xbf16>, vector<32x32xbf16>, vector<2x32xf32> -> vector<2x32xf32>
    %c0_219 = arith.constant 0 : index
    %c0_220 = arith.constant 0 : index
    %401 = vector.load %arg21[%c0_219, %c0_220] : memref<1x32xf32, #tpu.memory_space<vmem>>, vector<1x32xf32>
    %402 = vector.broadcast %401 : vector<1x32xf32> to vector<2x32xf32>
    %403 = arith.addf %400, %402 : vector<2x32xf32>
    %404 = math.tanh %403 : vector<2x32xf32>
    %405 = arith.truncf %404 : vector<2x32xf32> to vector<2x32xbf16>
    %c0_221 = arith.constant 0 : index
    %c0_222 = arith.constant 0 : index
    %406 = vector.load %arg22[%c0_221, %c0_222] : memref<32x4xbf16, #tpu.memory_space<vmem>>, vector<32x4xbf16>
    %cst_223 = arith.constant dense<0.000000e+00> : vector<2x4xf32>
    %407 = tpu.matmul %405, %406, %cst_223 {dimension_numbers = #tpu.dot_dimension_numbers<[1], [0], [0], [1], [0, 0, 1, 1], [], []>} : vector<2x32xbf16>, vector<32x4xbf16>, vector<2x4xf32> -> vector<2x4xf32>
    %c0_224 = arith.constant 0 : index
    %c0_225 = arith.constant 0 : index
    %408 = vector.load %arg23[%c0_224, %c0_225] : memref<1x4xf32, #tpu.memory_space<vmem>>, vector<1x4xf32>
    %409 = vector.broadcast %408 : vector<1x4xf32> to vector<2x4xf32>
    %410 = arith.addf %407, %409 : vector<2x4xf32>
    %c0_226 = arith.constant 0 : index
    %c0_227 = arith.constant 0 : index
    %411 = vector.load %arg24[%c0_226, %c0_227] : memref<2x4xf32, #tpu.memory_space<vmem>>, vector<2x4xf32>
    tpu.vector_store %arg24[%c0_226, %c0_227], %410 {strides = array<i32>} : memref<2x4xf32, #tpu.memory_space<vmem>>, vector<2x4xf32>,
    return
  }
}

</mosaic_0001>

<bundles_post_ra>
// kernel: bert_class_forward.1
= control target key start
LH: loop header
LB: loop body
LE: loop exit
PB: predicated region body
PF: predicated region fallthrough
CT: control target
= control target key end

     0   :  { %s4088_s0 = inlined_call_operand.vmem [shape: f32[16,32], index: 0, kind: input, shape index: {}]   ;;  %s4089_s1 = inlined_call_operand.vmem [shape: f32[2,8], index: 1, kind: input, shape index: {}]   ;;  %s4090_s2 = inlined_call_operand.vmem [shape: f32[1,32], index: 2, kind: input, shape index: {}]   ;;  %s4091_s3 = inlined_call_operand.vmem [shape: f32[1,32], index: 3, kind: input, shape index: {}]   ;;  %s4092_s4 = inlined_call_operand.vmem [shape: bf16[4,32,16], index: 4, kind: input, shape index: {}]   ;;  %s4093_s5 = inlined_call_operand.vmem [shape: bf16[4,32,16], index: 5, kind: input, shape index: {}]   ;;  %s4094_s6 = inlined_call_operand.vmem [shape: bf16[4,32,16], index: 6, kind: input, shape index: {}]   ;;  %s4095_s7 = inlined_call_operand.vmem [shape: f32[4,1,16], index: 7, kind: input, shape index: {}]   ;;  %s4096_s8 = inlined_call_operand.vmem [shape: f32[4,1,16], index: 8, kind: input, shape index: {}]   ;;  %s4097_s9 = inlined_call_operand.vmem [shape: f32[4,1,16], index: 9, kind: input, shape index: {}]   ;;  %s4098_s10 = inlined_call_operand.vmem [shape: bf16[4,16,32], index: 10, kind: input, shape index: {}]   ;;  %s4099_s11 = inlined_call_operand.vmem [shape: f32[2,1,32], index: 11, kind: input, shape index: {}]   ;;  %s4100_s12 = inlined_call_operand.vmem [shape: f32[2,1,32], index: 12, kind: input, shape index: {}]   ;;  %s4101_s13 = inlined_call_operand.vmem [shape: f32[2,1,32], index: 13, kind: input, shape index: {}]   ;;  %s4102_s14 = inlined_call_operand.vmem [shape: bf16[2,32,64], index: 14, kind: input, shape index: {}]   ;;  %s4103_s15 = inlined_call_operand.vmem [shape: f32[2,1,64], index: 15, kind: input, shape index: {}]   ;;  %s4104_s16 = inlined_call_operand.vmem [shape: bf16[2,64,32], index: 16, kind: input, shape index: {}]   ;;  %s4105_s17 = inlined_call_operand.vmem [shape: f32[2,1,32], index: 17, kind: input, shape index: {}]   ;;  %s4106_s18 = inlined_call_operand.vmem [shape: f32[2,1,32], index: 18, kind: input, shape index: {}]   ;;  %s4107_s19 = inlined_call_operand.vmem [shape: f32[2,1,32], index: 19, kind: input, shape index: {}]   ;;  %s4108_s20 = inlined_call_operand.vmem [shape: bf16[32,32], index: 20, kind: input, shape index: {}]   ;;  %s4109_s21 = inlined_call_operand.vmem [shape: f32[1,32], index: 21, kind: input, shape index: {}]   ;;  %s4110_s22 = inlined_call_operand.vmem [shape: bf16[32,4], index: 22, kind: input, shape index: {}]   ;;  %s4111_s23 = inlined_call_operand.vmem [shape: f32[1,4], index: 23, kind: input, shape index: {}]   ;;  %s4112_s24 = inlined_call_operand.hbm [shape: f32[2,4], index: 24, kind: output, shape index: {}]  }
   0x1   :  { %4119 = sst [smem:[#allocation5_spill]] %s4088_s0 }
   0x2   :  { %4120 = sst [smem:[#allocation6_spill]] %s4089_s1 }
   0x3   :  { %4121 = sst [smem:[#allocation7_spill]] %s4090_s2 }
   0x4   :  { %4122 = sst [smem:[#allocation8_spill]] %s4091_s3 }
   0x5   :  { %4123 = sst [smem:[#allocation9_spill]] %s4092_s4 }
   0x6   :  { %4124 = sst [smem:[#allocation10_spill]] %s4093_s5 }
   0x7   :  { %4125 = sst [smem:[#allocation11_spill]] %s4094_s6 }
   0x8   :  { %4126 = sst [smem:[#allocation12_spill]] %s4095_s7 }
   0x9   :  { %4127 = sst [smem:[#allocation13_spill]] %s4096_s8 }
   0xa   :  { %s4128_s27 = sld [smem:[#allocation5_spill]]  ;;  %vm83_vm0 = vcmask 261120  }
  0x10   :  { %v79_v0 = vld [vmem:[%s4128_s27] sm:$0xff]  ;;  %v80_v1 = vld [vmem:[%s4128_s27 + $0x8] sm:$0xff] }
  0x11   :  { %v84_v2 = vsel %vm83_vm0, %v79_v0, 0.0  ;;  %v87_v3 = vsel %vm83_vm0, %v80_v1, 0.0 }
  0x12   :  { %85 = vadd.xlane.f32.xlu0 %v84_v2 }
  0x16   :  { %88 = vadd.xlane.f32.xlu0 %v87_v3 }
  0x17   :  { %29 = vsyncpa [#allocation3], 0  ;;  %s4129_s0 = sld [smem:[#allocation9_spill]]  ;;  %v3443_v16 = vmov 0.0   ;;  %vm3444_vm1 = vmmov 0   ;;  %vm356_vm2 = vcmask 130048  }
  0x18   :  { %s4130_s3 = sld [smem:[#allocation10_spill]]  ;;  %3039 = vmatprep.subr.bf16.mxu0 %v3443_v16  ;;  %3047 = vmatprep.subr.bf16.mxu1 %v3443_v16  ;;  %v2769_v52 = vld [vmem:[%s4097_s9] ss:$0 sm:$0xff]  ;;  %vm491_vm3 = vcmask 1043456   ;;  %vm463_vm4 = vcmask 64512   ;;  %vm1286_vm5 = vcmask 523264  }
  0x19   :  { %3043 = vmatprep.mubr.msk.bf16.mxu0 %vm3444_vm1, %v3443_v16  ;;  %3051 = vmatprep.mubr.msk.bf16.mxu1 %vm3444_vm1, %v3443_v16  ;;  %s4131_s27 = sld [smem:[#allocation7_spill]]  ;;  %vm2606_vm6 = vcmask 1040384   ;;  %vm2743_vm7 = vcmask 25600  }
  0x1a   :  { %s4132_s2 = sld [smem:[#allocation8_spill]] }
  0x1b   :  { %s4133_s30 = sld [smem:[#allocation11_spill]] }
  0x1c   :  { %s4134_s5 = sld [smem:[#allocation13_spill]] }
  0x1d   :  { %v3315_v14 = vld [vmem:[%s4129_s0 + $0x8] sm:$0xff]   ;;  %v3317_v17 = vld [vmem:[%s4129_s0] sm:$0xff]   ;;  %s4135_s28 = sld [smem:[#allocation12_spill]] }
  0x1e   :  { %v3316_v15 = vld [vmem:[%s4130_s3 + $0x8] sm:$0xff]   ;;  %3040 = vmatpush3.bf16.msra.mxu0 %v3315_v14  ;;  %v3318_v18 = vld [vmem:[%s4130_s3] sm:$0xff]   ;;  %s4136_s25 = sld [smem:[#allocation6_spill]] }
  0x1f   :  { %3048 = vmatpush3.bf16.msra.mxu1 %v3316_v15  ;;  %3041 = vmatprep.subr.bf16.mxu0 %v3443_v16  ;;  %v2759_v27 = vld [vmem:[%s4131_s27] ss:$0 sm:$0xff] }
  0x20   :  { %3049 = vmatprep.subr.bf16.mxu1 %v3443_v16  ;;  %v2760_v31 = vld [vmem:[%s4132_s2] ss:$0 sm:$0xff] }
  0x21   :  { %v3319_v35 = vld [vmem:[%s4133_s30 + $0x8] sm:$0xff]   ;;  %v3320_v37 = vld [vmem:[%s4133_s30] sm:$0xff]  }
  0x22   :  { %3042 = vmatpush3.bf16.msra.mxu0 %v3317_v17  ;;  %v2765_v38 = vld [vmem:[%s4134_s5] ss:$0 sm:$0xff] }
  0x23   :  { %3050 = vmatpush3.bf16.msra.mxu1 %v3318_v18  ;;  %3055 = vmatprep.subr.bf16.mxu0 %v3443_v16  ;;  %v2761_v45 = vld [vmem:[%s4135_s28] ss:$0 sm:$0xff] }
  0x24   :  { %3063 = vmatprep.subr.bf16.mxu1 %v3443_v16 }
  0x9b   :  { %v86_v4 = vpop.xlane.xlu0 %85 }
  0x9c   :  { %v91_v5 = vmul.f32 0.03125, %v86_v4 }
  0x9e   :  { %v93_v6 = vsub.f32 %v79_v0, %v91_v5  ;;  %v3445_v5 = vmov 1966171168  }
  0x9f   :  { %v89_v7 = vpop.xlane.xlu0 %88 }
  0xa0   :  { %v92_v8 = vmul.f32 0.03125, %v89_v7  ;;  %v95_v9 = vmul.f32 %v93_v6, %v93_v6  ;;  %v134_v7 = vlaneseq }
  0xa2   :  { %v94_v10 = vsub.f32 %v80_v1, %v92_v8  ;;  %v97_v11 = vsel %vm83_vm0, %v95_v9, 0.0  ;;  %v127_v8 = vld [vmem:[%s4136_s25] sm:$0x3] }
  0xa3   :  { %98 = vadd.xlane.f32.xlu1 %v97_v11  ;;  %v128_v9 = vsub.f32 1.0, %v127_v8  ;;  %v135_v11 = vshrl.u32 %v134_v7, 7  ;;  %v3327_v7 = vld [vmem:[%s4130_s3 + $0x10] sm:$0xff]  }
  0xa4   :  { %v96_v12 = vmul.f32 %v94_v10, %v94_v10 }
  0xa5   :  { %v453_v17 = vsub.s32 0, %v135_v11 }
  0xa6   :  { %v100_v13 = vsel %vm83_vm0, %v96_v12, 0.0  ;;  %v129_v12 = vmul.f32 -10000.0, %v128_v9 }
  0xa7   :  { %101 = vadd.xlane.f32.xlu1 %v100_v13 }
 0x12c   :  { %v99_v19 = vpop.xlane.xlu1 %98 }
 0x12d   :  { %v103_v20 = vmul.f32 0.03125, %v99_v19 }
 0x12f   :  { %v105_v21 = vadd.f32 1e-12, %v103_v20 }
 0x130   :  { %v102_v22 = vpop.xlane.xlu1 %101 }
 0x131   :  { %3359 = vrsqrt.f32 %v105_v21  ;;  %v104_v23 = vmul.f32 0.03125, %v102_v22 }
 0x133   :  { %v106_v24 = vadd.f32 1e-12, %v104_v23 }
 0x135   :  { %3361 = vrsqrt.f32 %v106_v24 }
 0x13e   :  { %v3360_v25 = vpop.eup %3359 }
 0x13f   :  { %v109_v26 = vmul.f32 %v3360_v25, %v93_v6  ;;  %v132_v6 = vunpack.c.l.s4 %v3445_v5 }
 0x141   :  { %v117_v29 = vmul.f32 %v2759_v27, %v109_v26 }
 0x142   :  { %v3362_v28 = vpop.eup %3361 }
 0x143   :  { %v110_v30 = vmul.f32 %v3362_v28, %v94_v10  ;;  %v3610_v33 = vadd.f32 %v2760_v31, %v117_v29  ;;  %v133_v10 = vunpack.c.0.s8 %v132_v6 }
 0x145   :  { %v118_v32 = vmul.f32 %v2759_v27, %v110_v30  ;;  %v136_v13 = vsub.s32 %v133_v10, %v135_v11 }
 0x147   :  { %v3612_v34 = vadd.f32 %v2760_v31, %v118_v32  ;;  %v137_v14 = vrot.slane %v129_v12, %v136_v13 }
 0x149   :  { %v3619_v36 = vpack.c.bf16 %v3612_v34, %v3610_v33  ;;  %v145_v15 = vrot.slane %v137_v14, %v136_v13  ;;  %v138_v18 = vcombine.high %v137_v14, %v137_v14 }
 0x14b   :  { %3044 = vmatmul.mubr.msk.bf16.vlgmr.msra.gmra.mxu0 %vm83_vm0, %v3619_v36  ;;  %3052 = vmatmul.mubr.msk.bf16.vlgmr.msra.gmra.mxu1 %vm83_vm0, %v3619_v36  ;;  %v3664_v19 = vrot.slane %v145_v15, %v453_v17  ;;  %v152_v20 = vrot.slane %v138_v18, %v136_v13 }
 0x14c   :  { %3056 = vmatpush3.bf16.msra.mxu0 %v3319_v35  ;;  %3059 = vmatprep.mubr.msk.bf16.mxu0 %vm3444_vm1, %v3443_v16 }
 0x14d   :  { %3057 = vmatprep.subr.bf16.mxu0 %v3443_v16  ;;  %3065 = vmatprep.mubr.msk.bf16.mxu1 %vm3444_vm1, %v3443_v16  ;;  %v3667_v25 = vrot.slane %v152_v20, %v453_v17 }
 0x150   :  { %3058 = vmatpush3.bf16.msra.mxu0 %v3320_v37 }
 0x151   :  { %3069 = vmatprep.subr.bf16.mxu0 %v3443_v16 }
 0x153   :  { %3060 = vmatmul.mubr.msk.bf16.vlgmr.msra.gmra.mxu0 %vm83_vm0, %v3619_v36 }
 0x154   :  { %3071 = vmatprep.mubr.msk.bf16.mxu0 %vm3444_vm1, %v3443_v16 }
 0x20b   :  { %v215_v39 = vpop.f32.mrf.mxu0  ;;  %v281_v40 = vpop.f32.mrf.mxu1 }
 0x20c   :  { %v282_v41 = vadd.f32 %v2765_v38, %v281_v40  ;;  %v216_v53 = vadd.f32 %v2761_v45, %v215_v39 }
 0x20d   :  { %v3045_v42 = vpop.f32.mrf.mxu0  ;;  %v3053_v43 = vpop.f32.mrf.mxu1 }
 0x20e   :  { %v288_v44 = vpack.c.bf16 %v282_v41, %v282_v41  ;;  %v222_v59 = vpack.c.bf16 %v216_v53, %v216_v53 }
 0x20f   :  { %v218_v46 = vpop.f32.mrf.mxu0  ;;  %v284_v47 = vpop.f32.mrf.mxu1 }
 0x210   :  { %v361_v48 = vsel %vm356_vm2, %v288_v44, 0  ;;  %v285_v49 = vadd.f32 %v2765_v38, %v284_v47  ;;  %v219_v60 = vadd.f32 %v2761_v45, %v218_v46 }
 0x211   :  { %v3046_v50 = vpop.f32.mrf.mxu0  ;;  %v3054_v51 = vpop.f32.mrf.mxu1  ;;  %3064 = vmatpush3.bf16.xpose.msra.mxu1 %v361_v48 }
 0x212   :  { %v289_v54 = vpack.c.bf16 %v285_v49, %v285_v49  ;;  %3075 = vmatprep.subr.bf16.mxu1 %v3443_v16  ;;  %v223_v2 = vpack.c.bf16 %v219_v60, %v219_v60  ;;  %v3324_v60 = vld [vmem:[%s4133_s30 + $0x10] sm:$0xff]  }
 0x213   :  { %v347_v55 = vpop.f32.mrf.mxu0 }
 0x214   :  { %v407_v56 = vsel %vm356_vm2, %v289_v54, 0  ;;  %v348_v57 = vadd.f32 %v2769_v52, %v347_v55 }
 0x215   :  { %v3061_v58 = vpop.f32.mrf.mxu0  ;;  %3070 = vmatpush3.bf16.xpose.msra.mxu0 %v407_v56  ;;  %v3321_v56 = vld [vmem:[%s4129_s0 + $0x18] sm:$0xff]  }
 0x216   :  { %v354_v61 = vpack.c.bf16 %v348_v57, %v348_v57  ;;  %3081 = vmatprep.subr.bf16.mxu0 %v3443_v16  ;;  %v3322_v58 = vld [vmem:[%s4129_s0 + $0x10] sm:$0xff]  }
 0x217   :  { %v350_v62 = vpop.f32.mrf.mxu0 }
 0x218   :  { %v493_v63 = vsel %vm491_vm3, %v354_v61, 0  ;;  %v351_v0 = vadd.f32 %v2769_v52, %v350_v62  ;;  %3066 = vmatmul.mubr.msk.bf16.vlgmr.msra.gmra.mxu1 %vm356_vm2, %v222_v59  ;;  %v3323_v59 = vld [vmem:[%s4133_s30 + $0x18] sm:$0xff]   ;;  %v3325_v61 = vld [vmem:[%s4098_s10] sm:$0xff]  }
 0x219   :  { %v3062_v1 = vpop.f32.mrf.mxu0  ;;  %3076 = vmatpush3.bf16.msra.mxu1 %v493_v63  ;;  %3077 = vmatprep.mubr.msk.bf16.mxu1 %vm3444_vm1, %v3443_v16 }
 0x21a   :  { %v355_v3 = vpack.c.bf16 %v351_v0, %v351_v0  ;;  %3087 = vmatprep.subr.bf16.mxu1 %v3443_v16 }
 0x21c   :  { %v539_v4 = vsel %vm491_vm3, %v355_v3, 0  ;;  %3072 = vmatmul.mubr.msk.bf16.vlgmr.msra.gmra.mxu0 %vm356_vm2, %v223_v2  ;;  %v3326_v2 = vld [vmem:[%s4130_s3 + $0x18] sm:$0xff]  }
 0x21d   :  { %3082 = vmatpush3.bf16.msra.mxu0 %v539_v4  ;;  %3083 = vmatprep.mubr.msk.bf16.mxu0 %vm3444_vm1, %v3443_v16 }
 0x21e   :  { %3093 = vmatprep.subr.bf16.mxu0 %v3443_v16 }
 0x2d8   :  { %v397_v21 = vpop.f32.mrf.mxu1 }
 0x2d9   :  { %v449_v22 = vmul.f32 0.25, %v397_v21 }
 0x2da   :  { %v3067_v23 = vpop.f32.mrf.mxu1 }
 0x2db   :  { %v461_v24 = vadd.f32 %v3664_v19, %v449_v22  ;;  %v2794_v23 = vld [vmem:[%s4134_s5 + $0x1] ss:$0 sm:$0xff] }
 0x2dc   :  { %v400_v26 = vpop.f32.mrf.mxu1  ;;  %v443_v27 = vpop.f32.mrf.mxu0 }
 0x2dd   :  { %v450_v28 = vmul.f32 0.25, %v443_v27  ;;  %v464_v29 = vsel %vm463_vm4, %v461_v24, -inf  ;;  %v2803_v26 = vld [vmem:[%s4097_s9 + $0x1] ss:$0 sm:$0xff] }
 0x2de   :  { %465 = vmax.xlane.f32.xlu0 %v464_v29  ;;  %v3068_v30 = vpop.f32.mrf.mxu1  ;;  %v3073_v31 = vpop.f32.mrf.mxu0  ;;  %v2785_v29 = vld [vmem:[%s4135_s28 + $0x1] ss:$0 sm:$0xff] }
 0x2df   :  { %v462_v32 = vadd.f32 %v3667_v25, %v450_v28 }
 0x2e0   :  { %v446_v35 = vpop.f32.mrf.mxu0 }
 0x2e1   :  { %v467_v37 = vsel %vm463_vm4, %v462_v32, -inf }
 0x2e2   :  { %468 = vmax.xlane.f32.xlu1 %v467_v37  ;;  %v3074_v38 = vpop.f32.mrf.mxu0 }
 0x367   :  { %v466_v39 = vpop.xlane.xlu0 %465 }
 0x368   :  { %v470_v40 = vsub.f32 %v461_v24, %v466_v39 }
 0x36a   :  { %v472_v41 = vmul.f32 1.442695, %v470_v40 }
 0x36b   :  { %v469_v42 = vpop.xlane.xlu1 %468 }
 0x36c   :  { %3363 = vpow2.f32 %v472_v41  ;;  %v471_v43 = vsub.f32 %v462_v32, %v469_v42 }
 0x36e   :  { %v474_v44 = vmul.f32 1.442695, %v471_v43 }
 0x370   :  { %3365 = vpow2.f32 %v474_v44 }
 0x379   :  { %v3364_v45 = vpop.eup %3363 }
 0x37a   :  { %v476_v46 = vsel %vm463_vm4, %v3364_v45, 0.0 }
 0x37b   :  { %477 = vadd.xlane.f32.xlu0 %v476_v46 }
 0x37d   :  { %v3366_v47 = vpop.eup %3365 }
 0x37e   :  { %v479_v48 = vsel %vm463_vm4, %v3366_v47, 0.0 }
 0x37f   :  { %480 = vadd.xlane.f32.xlu1 %v479_v48 }
 0x404   :  { %v478_v49 = vpop.xlane.xlu0 %477 }
 0x405   :  { %3367 = vrcp.f32 %v478_v49 }
 0x408   :  { %v481_v50 = vpop.xlane.xlu1 %480 }
 0x409   :  { %3369 = vrcp.f32 %v481_v50 }
 0x412   :  { %v3368_v51 = vpop.eup %3367 }
 0x413   :  { %v484_v52 = vmul.f32 %v3368_v51, %v3364_v45 }
 0x415   :  { %v486_v53 = vpack.c.bf16 %v484_v52, %v484_v52 }
 0x416   :  { %v3370_v54 = vpop.eup %3369 }
 0x417   :  { %3078 = vmatmul.mubr.msk.bf16.vlgmr.msra.gmra.mxu1 %vm463_vm4, %v486_v53  ;;  %v485_v55 = vmul.f32 %v3370_v54, %v3366_v47 }
 0x418   :  { %3089 = vmatprep.mubr.msk.bf16.mxu1 %vm3444_vm1, %v3443_v16  ;;  %3088 = vmatpush3.bf16.msra.mxu1 %v3325_v61 }
 0x419   :  { %v487_v57 = vpack.c.bf16 %v485_v55, %v485_v55  ;;  %3101 = vmatprep.subr.bf16.mxu1 %v3443_v16 }
 0x41b   :  { %3084 = vmatmul.mubr.msk.bf16.vlgmr.msra.gmra.mxu0 %vm463_vm4, %v487_v57 }
 0x41c   :  { %3094 = vmatpush3.bf16.msra.mxu0 %v3321_v56  ;;  %3097 = vmatprep.mubr.msk.bf16.mxu0 %vm3444_vm1, %v3443_v16 }
 0x41d   :  { %3095 = vmatprep.subr.bf16.mxu0 %v3443_v16 }
 0x420   :  { %3096 = vmatpush3.bf16.msra.mxu0 %v3322_v58 }
 0x421   :  { %3109 = vmatprep.subr.bf16.mxu0 %v3443_v16 }
 0x423   :  { %3098 = vmatmul.mubr.msk.bf16.vlgmr.msra.gmra.mxu0 %vm83_vm0, %v3619_v36 }
 0x424   :  { %3110 = vmatpush3.bf16.msra.mxu0 %v3323_v59  ;;  %3113 = vmatprep.mubr.msk.bf16.mxu0 %vm3444_vm1, %v3443_v16 }
 0x425   :  { %3111 = vmatprep.subr.bf16.mxu0 %v3443_v16 }
 0x428   :  { %3112 = vmatpush3.bf16.msra.mxu0 %v3324_v60 }
 0x429   :  { %3123 = vmatprep.subr.bf16.mxu0 %v3443_v16 }
 0x42b   :  { %3114 = vmatmul.mubr.msk.bf16.vlgmr.msra.gmra.mxu0 %vm83_vm0, %v3619_v36 }
 0x42c   :  { %3125 = vmatprep.mubr.msk.bf16.mxu0 %vm3444_vm1, %v3443_v16 }
 0x4d7   :  { %v529_v62 = vpop.f32.mrf.mxu1 }
 0x4d9   :  { %v3079_v63 = vpop.f32.mrf.mxu1 }
 0x4db   :  { %v532_v0 = vpop.f32.mrf.mxu1  ;;  %v575_v1 = vpop.f32.mrf.mxu0 }
 0x4dc   :  { %v581_v3 = vpack.c.bf16 %v575_v1, %v529_v62 }
 0x4dd   :  { %v3080_v4 = vpop.f32.mrf.mxu1  ;;  %v3085_v5 = vpop.f32.mrf.mxu0 }
 0x4de   :  { %3090 = vmatmul.mubr.msk.bf16.vlgmr.msra.gmra.mxu1 %vm356_vm2, %v581_v3 }
 0x4df   :  { %v578_v6 = vpop.f32.mrf.mxu0  ;;  %3102 = vmatpush3.bf16.msra.mxu1 %v3326_v2  ;;  %3105 = vmatprep.mubr.msk.bf16.mxu1 %vm3444_vm1, %v3443_v16 }
 0x4e0   :  { %3103 = vmatprep.subr.bf16.mxu1 %v3443_v16 }
 0x4e1   :  { %v3086_v8 = vpop.f32.mrf.mxu0 }
 0x4e3   :  { %v701_v9 = vpop.f32.mrf.mxu0  ;;  %3104 = vmatpush3.bf16.msra.mxu1 %v3327_v7 }
 0x4e4   :  { %3117 = vmatprep.subr.bf16.mxu1 %v3443_v16  ;;  %v702_v38 = vadd.f32 %v2785_v29, %v701_v9 }
 0x4e5   :  { %v3099_v10 = vpop.f32.mrf.mxu0 }
 0x4e6   :  { %3106 = vmatmul.mubr.msk.bf16.vlgmr.msra.gmra.mxu1 %vm83_vm0, %v3619_v36  ;;  %v708_v43 = vpack.c.bf16 %v702_v38, %v702_v38 }
 0x4e7   :  { %v704_v11 = vpop.f32.mrf.mxu0  ;;  %3119 = vmatprep.mubr.msk.bf16.mxu1 %vm3444_vm1, %v3443_v16 }
 0x4e8   :  { %v705_v44 = vadd.f32 %v2785_v29, %v704_v11 }
 0x4e9   :  { %v3100_v12 = vpop.f32.mrf.mxu0 }
 0x4ea   :  { %v709_v47 = vpack.c.bf16 %v705_v44, %v705_v44 }
 0x4eb   :  { %v837_v13 = vpop.f32.mrf.mxu0 }
 0x4ec   :  { %v838_v31 = vadd.f32 %v2803_v26, %v837_v13 }
 0x4ed   :  { %v3115_v14 = vpop.f32.mrf.mxu0 }
 0x4ee   :  { %v844_v40 = vpack.c.bf16 %v838_v31, %v838_v31  ;;  %v2779_v31 = vld [vmem:[%s4099_s11] ss:$0 sm:$0xff] }
 0x4ef   :  { %v840_v15 = vpop.f32.mrf.mxu0 }
 0x4f0   :  { %v841_v41 = vadd.f32 %v2803_v26, %v840_v15  ;;  %v970_v45 = vsel %vm491_vm3, %v844_v40, 0 }
 0x4f1   :  { %v3116_v17 = vpop.f32.mrf.mxu0 }
 0x4f2   :  { %v845_v46 = vpack.c.bf16 %v841_v41, %v841_v41 }
 0x4f4   :  { %v1016_v48 = vsel %vm491_vm3, %v845_v46, 0 }
 0x59e   :  { %v3723_v18 = vpop.f32.mrf.mxu1 }
 0x5a0   :  { %v3091_v20 = vpop.f32.mrf.mxu1 }
 0x5a1   :  { %v3328_v20 = vld [vmem:[%s4098_s10 + $0x8] sm:$0xff]  }
 0x5a2   :  { %v3725_v21 = vpop.f32.mrf.mxu1 }
 0x5a4   :  { %v3092_v22 = vpop.f32.mrf.mxu1 }
 0x5a6   :  { %v769_v36 = vpop.f32.mrf.mxu1 }
 0x5a7   :  { %v770_v24 = vadd.f32 %v2794_v23, %v769_v36 }
 0x5a8   :  { %v3107_v27 = vpop.f32.mrf.mxu1 }
 0x5a9   :  { %v776_v28 = vpack.c.bf16 %v770_v24, %v770_v24 }
 0x5aa   :  { %v772_v30 = vpop.f32.mrf.mxu1 }
 0x5ab   :  { %v850_v32 = vsel %vm356_vm2, %v776_v28, 0  ;;  %v773_v35 = vadd.f32 %v2794_v23, %v772_v30 }
 0x5ac   :  { %v3108_v37 = vpop.f32.mrf.mxu1  ;;  %3118 = vmatpush3.bf16.xpose.msra.mxu1 %v850_v32  ;;  %v640_v32 = vadd.f32 %v2779_v31, %v3723_v18 }
 0x5ad   :  { %v777_v39 = vpack.c.bf16 %v773_v35, %v773_v35  ;;  %3129 = vmatprep.subr.bf16.mxu1 %v3443_v16 }
 0x5af   :  { %v896_v42 = vsel %vm356_vm2, %v777_v39, 0  ;;  %v641_v39 = vadd.f32 %v2779_v31, %v3725_v21 }
 0x5b0   :  { %3124 = vmatpush3.bf16.xpose.msra.mxu0 %v896_v42 }
 0x5b1   :  { %3135 = vmatprep.subr.bf16.mxu0 %v3443_v16 }
 0x5b3   :  { %3120 = vmatmul.mubr.msk.bf16.vlgmr.msra.gmra.mxu1 %vm356_vm2, %v708_v43 }
 0x5b4   :  { %3130 = vmatpush3.bf16.msra.mxu1 %v970_v45  ;;  %3131 = vmatprep.mubr.msk.bf16.mxu1 %vm3444_vm1, %v3443_v16 }
 0x5b5   :  { %3141 = vmatprep.subr.bf16.mxu1 %v3443_v16 }
 0x5b7   :  { %3126 = vmatmul.mubr.msk.bf16.vlgmr.msra.gmra.mxu0 %vm356_vm2, %v709_v47 }
 0x5b8   :  { %3136 = vmatpush3.bf16.msra.mxu0 %v1016_v48  ;;  %3137 = vmatprep.mubr.msk.bf16.mxu0 %vm3444_vm1, %v3443_v16 }
 0x5b9   :  { %3147 = vmatprep.subr.bf16.mxu0 %v3443_v16 }
 0x673   :  { %v886_v49 = vpop.f32.mrf.mxu1 }
 0x674   :  { %v938_v50 = vmul.f32 0.25, %v886_v49 }
 0x675   :  { %v3121_v51 = vpop.f32.mrf.mxu1 }
 0x676   :  { %v940_v52 = vadd.f32 %v938_v50, %v3664_v19 }
 0x677   :  { %v889_v53 = vpop.f32.mrf.mxu1  ;;  %v932_v54 = vpop.f32.mrf.mxu0 }
 0x678   :  { %v939_v55 = vmul.f32 0.25, %v932_v54  ;;  %v942_v56 = vsel %vm463_vm4, %v940_v52, -inf  ;;  %v3330_v54 = vld [vmem:[%s4102_s14] sm:$0xff]  }
 0x679   :  { %943 = vmax.xlane.f32.xlu0 %v942_v56  ;;  %v3122_v57 = vpop.f32.mrf.mxu1  ;;  %v3127_v58 = vpop.f32.mrf.mxu0 }
 0x67a   :  { %v941_v59 = vadd.f32 %v939_v55, %v3667_v25 }
 0x67b   :  { %v935_v60 = vpop.f32.mrf.mxu0 }
 0x67c   :  { %v945_v61 = vsel %vm463_vm4, %v941_v59, -inf }
 0x67d   :  { %946 = vmax.xlane.f32.xlu1 %v945_v61  ;;  %v3128_v62 = vpop.f32.mrf.mxu0 }
 0x702   :  { %v944_v63 = vpop.xlane.xlu0 %943 }
 0x703   :  { %v948_v0 = vsub.f32 %v940_v52, %v944_v63  ;;  %v2815_v63 = vld [vmem:[%s4100_s12] ss:$0 sm:$0xff] }
 0x705   :  { %v950_v1 = vmul.f32 1.442695, %v948_v0 }
 0x706   :  { %v947_v2 = vpop.xlane.xlu1 %946 }
 0x707   :  { %3371 = vpow2.f32 %v950_v1  ;;  %v949_v3 = vsub.f32 %v941_v59, %v947_v2 }
 0x709   :  { %v952_v4 = vmul.f32 1.442695, %v949_v3  ;;  %v2816_v3 = vld [vmem:[%s4101_s13] ss:$0 sm:$0xff] }
 0x70b   :  { %3373 = vpow2.f32 %v952_v4 }
 0x714   :  { %v3372_v5 = vpop.eup %3371 }
 0x715   :  { %v954_v6 = vsel %vm463_vm4, %v3372_v5, 0.0 }
 0x716   :  { %955 = vadd.xlane.f32.xlu0 %v954_v6 }
 0x718   :  { %v3374_v7 = vpop.eup %3373 }
 0x719   :  { %v957_v8 = vsel %vm463_vm4, %v3374_v7, 0.0 }
 0x71a   :  { %958 = vadd.xlane.f32.xlu1 %v957_v8  ;;  %v3331_v8 = vld [vmem:[%s4104_s16 + $0x18] sm:$0xff]  }
 0x79f   :  { %v956_v9 = vpop.xlane.xlu0 %955 }
 0x7a0   :  { %3375 = vrcp.f32 %v956_v9  ;;  %v3332_v9 = vld [vmem:[%s4104_s16 + $0x10] sm:$0xff]  }
 0x7a3   :  { %v959_v10 = vpop.xlane.xlu1 %958 }
 0x7a4   :  { %3377 = vrcp.f32 %v959_v10  ;;  %v3333_v10 = vld [vmem:[%s4104_s16 + $0x8] sm:$0xff]  }
 0x7ad   :  { %v3376_v11 = vpop.eup %3375 }
 0x7ae   :  { %v962_v12 = vmul.f32 %v3376_v11, %v3372_v5  ;;  %v3334_v11 = vld [vmem:[%s4104_s16] sm:$0xff]  }
 0x7b0   :  { %v964_v13 = vpack.c.bf16 %v962_v12, %v962_v12  ;;  %v2817_v12 = vld [vmem:[%s4103_s15] ss:$0 sm:$0xff] }
 0x7b1   :  { %v3378_v14 = vpop.eup %3377 }
 0x7b2   :  { %3132 = vmatmul.mubr.msk.bf16.vlgmr.msra.gmra.mxu1 %vm463_vm4, %v964_v13  ;;  %v963_v15 = vmul.f32 %v3378_v14, %v3374_v7 }
 0x7b3   :  { %3143 = vmatprep.mubr.msk.bf16.mxu1 %vm3444_vm1, %v3443_v16  ;;  %3142 = vmatpush3.bf16.msra.mxu1 %v3328_v20 }
 0x7b4   :  { %v965_v17 = vpack.c.bf16 %v963_v15, %v963_v15  ;;  %3155 = vmatprep.subr.bf16.mxu1 %v3443_v16 }
 0x7b6   :  { %3138 = vmatmul.mubr.msk.bf16.vlgmr.msra.gmra.mxu0 %vm463_vm4, %v965_v17 }
 0x7b7   :  { %3151 = vmatprep.mubr.msk.bf16.mxu0 %vm3444_vm1, %v3443_v16 }
 0x872   :  { %v1006_v22 = vpop.f32.mrf.mxu1 }
 0x874   :  { %v3133_v23 = vpop.f32.mrf.mxu1 }
 0x876   :  { %v1009_v36 = vpop.f32.mrf.mxu1  ;;  %v1052_v24 = vpop.f32.mrf.mxu0 }
 0x877   :  { %v1058_v26 = vpack.c.bf16 %v1052_v24, %v1006_v22 }
 0x878   :  { %v3134_v27 = vpop.f32.mrf.mxu1  ;;  %v3139_v28 = vpop.f32.mrf.mxu0 }
 0x879   :  { %3144 = vmatmul.mubr.msk.bf16.vlgmr.msra.gmra.mxu1 %vm356_vm2, %v1058_v26 }
 0x87a   :  { %v1055_v29 = vpop.f32.mrf.mxu0  ;;  %3163 = vmatprep.mubr.msk.bf16.mxu1 %vm3444_vm1, %v3443_v16  ;;  %3156 = vmatpush3.bf16.msra.mxu1 %v3331_v8 }
 0x87b   :  { %3157 = vmatprep.subr.bf16.mxu1 %v3443_v16 }
 0x87c   :  { %v3140_v30 = vpop.f32.mrf.mxu0 }
 0x87e   :  { %3158 = vmatpush3.bf16.msra.mxu1 %v3332_v9 }
 0x87f   :  { %3159 = vmatprep.subr.bf16.mxu1 %v3443_v16 }
 0x882   :  { %3160 = vmatpush3.bf16.msra.mxu1 %v3333_v10  ;;  %v2827_v10 = vld [vmem:[%s4106_s18] ss:$0 sm:$0xff] }
 0x883   :  { %3161 = vmatprep.subr.bf16.mxu1 %v3443_v16 }
 0x886   :  { %3162 = vmatpush3.bf16.msra.mxu1 %v3334_v11 }
 0x887   :  { %3183 = vmatprep.subr.bf16.mxu1 %v3443_v16 }
 0x939   :  { %v1105_v35 = vpop.f32.mrf.mxu1 }
 0x93a   :  { %v1112_v37 = vadd.f32 %v1105_v35, %v640_v32 }
 0x93b   :  { %v3145_v38 = vpop.f32.mrf.mxu1 }
 0x93c   :  { %v1114_v40 = vadd.f32 %v1112_v37, %v3610_v33 }
 0x93d   :  { %v1108_v41 = vpop.f32.mrf.mxu1 }
 0x93e   :  { %v1113_v42 = vadd.f32 %v1108_v41, %v641_v39  ;;  %v1118_v43 = vsel %vm83_vm0, %v1114_v40, 0.0 }
 0x93f   :  { %1119 = vadd.xlane.f32.xlu0 %v1118_v43  ;;  %v3146_v44 = vpop.f32.mrf.mxu1 }
 0x940   :  { %v1115_v45 = vadd.f32 %v1113_v42, %v3612_v34  ;;  %v3329_v34 = vld [vmem:[%s4102_s14 + $0x8] sm:$0xff]  }
 0x941   :  { %3148 = vmatpush3.bf16.msra.mxu0 %v3329_v34 }
 0x942   :  { %v1121_v46 = vsel %vm83_vm0, %v1115_v45, 0.0  ;;  %3149 = vmatprep.subr.bf16.mxu0 %v3443_v16 }
 0x943   :  { %1122 = vadd.xlane.f32.xlu1 %v1121_v46 }
 0x945   :  { %3150 = vmatpush3.bf16.msra.mxu0 %v3330_v54 }
 0x946   :  { %3167 = vmatprep.subr.bf16.mxu0 %v3443_v16 }
 0x9c8   :  { %v1120_v47 = vpop.xlane.xlu0 %1119 }
 0x9c9   :  { %v1124_v18 = vmul.f32 0.03125, %v1120_v47 }
 0x9cb   :  { %v1126_v48 = vsub.f32 %v1114_v40, %v1124_v18 }
 0x9cc   :  { %v1123_v49 = vpop.xlane.xlu1 %1122 }
 0x9cd   :  { %v1125_v50 = vmul.f32 0.03125, %v1123_v49  ;;  %v1128_v51 = vmul.f32 %v1126_v48, %v1126_v48 }
 0x9cf   :  { %v1127_v21 = vsub.f32 %v1115_v45, %v1125_v50  ;;  %v1130_v33 = vsel %vm83_vm0, %v1128_v51, 0.0  ;;  %v2821_v45 = vld [vmem:[%s4105_s17] ss:$0 sm:$0xff] }
 0x9d0   :  { %1131 = vadd.xlane.f32.xlu0 %v1130_v33 }
 0x9d1   :  { %v1129_v52 = vmul.f32 %v1127_v21, %v1127_v21 }
 0x9d3   :  { %v1133_v53 = vsel %vm83_vm0, %v1129_v52, 0.0 }
 0x9d4   :  { %1134 = vadd.xlane.f32.xlu1 %v1133_v53 }
 0xa59   :  { %v1132_v55 = vpop.xlane.xlu0 %1131 }
 0xa5a   :  { %v1136_v56 = vmul.f32 0.03125, %v1132_v55 }
 0xa5c   :  { %v1138_v57 = vadd.f32 1e-12, %v1136_v56 }
 0xa5d   :  { %v1135_v58 = vpop.xlane.xlu1 %1134 }
 0xa5e   :  { %3379 = vrsqrt.f32 %v1138_v57  ;;  %v1137_v59 = vmul.f32 0.03125, %v1135_v58 }
 0xa60   :  { %v1139_v60 = vadd.f32 1e-12, %v1137_v59 }
 0xa62   :  { %3381 = vrsqrt.f32 %v1139_v60 }
 0xa6b   :  { %v3380_v61 = vpop.eup %3379 }
 0xa6c   :  { %v1142_v62 = vmul.f32 %v3380_v61, %v1126_v48 }
 0xa6e   :  { %v1150_v2 = vmul.f32 %v2815_v63, %v1142_v62  ;;  %v3335_v62 = vld [vmem:[%s4129_s0 + $0x28] sm:$0xff]  }
 0xa6f   :  { %v3382_v0 = vpop.eup %3381 }
 0xa70   :  { %v1143_v1 = vmul.f32 %v3382_v0, %v1127_v21  ;;  %v1158_v5 = vadd.f32 %v2816_v3, %v1150_v2  ;;  %v3337_v0 = vld [vmem:[%s4129_s0 + $0x20] sm:$0xff]  }
 0xa72   :  { %v1151_v4 = vmul.f32 %v2815_v63, %v1143_v1  ;;  %v3336_v63 = vld [vmem:[%s4133_s30 + $0x28] sm:$0xff]   ;;  %v3338_v1 = vld [vmem:[%s4133_s30 + $0x20] sm:$0xff]  }
 0xa74   :  { %v1159_v6 = vadd.f32 %v2816_v3, %v1151_v4 }
 0xa76   :  { %v1160_v7 = vpack.c.bf16 %v1159_v6, %v1158_v5 }
 0xa78   :  { %3152 = vmatmul.mubr.msk.bf16.vlgmr.msra.gmra.mxu0 %vm83_vm0, %v1160_v7 }
 0xa79   :  { %3171 = vmatprep.mubr.msk.bf16.mxu0 %vm3444_vm1, %v3443_v16  ;;  %3168 = vmatpush3.bf16.msra.mxu0 %v3335_v62 }
 0xa7a   :  { %3169 = vmatprep.subr.bf16.mxu0 %v3443_v16 }
 0xa7d   :  { %3170 = vmatpush3.bf16.msra.mxu0 %v3337_v0 }
 0xa7e   :  { %3175 = vmatprep.subr.bf16.mxu0 %v3443_v16 }
 0xb38   :  { %v1221_v13 = vpop.f32.mrf.mxu0 }
 0xb39   :  { %v1222_v14 = vadd.f32 %v2817_v12, %v1221_v13 }
 0xb3a   :  { %v3153_v15 = vpop.f32.mrf.mxu0 }
 0xb3b   :  { %v1230_v17 = vmul.f32 0.044715, %v1222_v14  ;;  %v1228_v39 = vmul.f32 0.5, %v1222_v14 }
 0xb3c   :  { %v1224_v20 = vpop.f32.mrf.mxu0 }
 0xb3d   :  { %v1232_v22 = vmul.f32 %v1230_v17, %v1222_v14  ;;  %v1225_v23 = vadd.f32 %v2817_v12, %v1224_v20 }
 0xb3e   :  { %v3154_v36 = vpop.f32.mrf.mxu0 }
 0xb3f   :  { %v1234_v24 = vmul.f32 %v1232_v22, %v1222_v14  ;;  %v1231_v26 = vmul.f32 0.044715, %v1225_v23  ;;  %v1229_v40 = vmul.f32 0.5, %v1225_v23  ;;  %v3339_v22 = vld [vmem:[%s4130_s3 + $0x28] sm:$0xff]   ;;  %v3340_v36 = vld [vmem:[%s4130_s3 + $0x20] sm:$0xff]  }
 0xb41   :  { %v1236_v27 = vadd.f32 %v1234_v24, %v1222_v14  ;;  %v1233_v28 = vmul.f32 %v1231_v26, %v1225_v23  ;;  %v2828_v14 = vld [vmem:[%s4107_s19] ss:$0 sm:$0xff] }
 0xb43   :  { %v1238_v29 = vmul.f32 0.7978846, %v1236_v27  ;;  %v1235_v30 = vmul.f32 %v1233_v28, %v1225_v23 }
 0xb45   :  { %3383 = vtanh.f32 %v1238_v29  ;;  %v1237_v31 = vadd.f32 %v1235_v30, %v1225_v23 }
 0xb47   :  { %v1239_v32 = vmul.f32 0.7978846, %v1237_v31 }
 0xb49   :  { %3385 = vtanh.f32 %v1239_v32 }
 0xb52   :  { %v3384_v35 = vpop.eup %3383 }
 0xb53   :  { %v1242_v37 = vadd.f32 1.0, %v3384_v35  ;;  %v2844_v35 = vld [vmem:[%s4134_s5 + $0x2] ss:$0 sm:$0xff] }
 0xb55   :  { %v1244_v42 = vmul.f32 %v1242_v37, %v1228_v39  ;;  %v2853_v39 = vld [vmem:[%s4097_s9 + $0x2] ss:$0 sm:$0xff] }
 0xb56   :  { %v3386_v38 = vpop.eup %3385 }
 0xb57   :  { %v1243_v41 = vadd.f32 1.0, %v3386_v38 }
 0xb59   :  { %v1245_v43 = vmul.f32 %v1243_v41, %v1229_v40 }
 0xb5b   :  { %v1246_v44 = vpack.c.bf16 %v1245_v43, %v1244_v42  ;;  %v2835_v42 = vld [vmem:[%s4135_s28 + $0x2] ss:$0 sm:$0xff] }
 0xb5d   :  { %3164 = vmatmul.mubr.msk.bf16.vlgmr.msra.gmra.mxu1 %vm1286_vm5, %v1246_v44 }
 0xb5e   :  { %3187 = vmatprep.mubr.msk.bf16.mxu1 %vm3444_vm1, %v3443_v16  ;;  %3184 = vmatpush3.bf16.msra.mxu1 %v3336_v63 }
 0xb5f   :  { %3185 = vmatprep.subr.bf16.mxu1 %v3443_v16 }
 0xb62   :  { %3186 = vmatpush3.bf16.msra.mxu1 %v3338_v1 }
 0xb63   :  { %3197 = vmatprep.subr.bf16.mxu1 %v3443_v16 }
 0xc1d   :  { %v1324_v46 = vpop.f32.mrf.mxu1 }
 0xc1e   :  { %v1325_v47 = vadd.f32 %v2821_v45, %v1324_v46 }
 0xc1f   :  { %v3165_v18 = vpop.f32.mrf.mxu1 }
 0xc20   :  { %v1331_v48 = vadd.f32 %v1325_v47, %v1158_v5 }
 0xc21   :  { %v1327_v49 = vpop.f32.mrf.mxu1 }
 0xc22   :  { %v1328_v50 = vadd.f32 %v2821_v45, %v1327_v49  ;;  %v1335_v51 = vsel %vm83_vm0, %v1331_v48, 0.0 }
 0xc23   :  { %1336 = vadd.xlane.f32.xlu0 %v1335_v51  ;;  %v3166_v21 = vpop.f32.mrf.mxu1 }
 0xc24   :  { %v1332_v33 = vadd.f32 %v1328_v50, %v1159_v6 }
 0xc26   :  { %v1338_v52 = vsel %vm83_vm0, %v1332_v33, 0.0 }
 0xc27   :  { %1339 = vadd.xlane.f32.xlu1 %v1338_v52 }
 0xcac   :  { %v1337_v53 = vpop.xlane.xlu0 %1336 }
 0xcad   :  { %v1341_v34 = vmul.f32 0.03125, %v1337_v53 }
 0xcaf   :  { %v1343_v54 = vsub.f32 %v1331_v48, %v1341_v34 }
 0xcb0   :  { %v1340_v55 = vpop.xlane.xlu1 %1339 }
 0xcb1   :  { %v1342_v56 = vmul.f32 0.03125, %v1340_v55  ;;  %v1345_v57 = vmul.f32 %v1343_v54, %v1343_v54 }
 0xcb3   :  { %v1344_v58 = vsub.f32 %v1332_v33, %v1342_v56  ;;  %v1347_v59 = vsel %vm83_vm0, %v1345_v57, 0.0 }
 0xcb4   :  { %1348 = vadd.xlane.f32.xlu0 %v1347_v59 }
 0xcb5   :  { %v1346_v60 = vmul.f32 %v1344_v58, %v1344_v58 }
 0xcb7   :  { %v1350_v61 = vsel %vm83_vm0, %v1346_v60, 0.0 }
 0xcb8   :  { %1351 = vadd.xlane.f32.xlu1 %v1350_v61 }
 0xd3d   :  { %v1349_v2 = vpop.xlane.xlu0 %1348 }
 0xd3e   :  { %v1353_v3 = vmul.f32 0.03125, %v1349_v2 }
 0xd40   :  { %v1355_v4 = vadd.f32 1e-12, %v1353_v3 }
 0xd41   :  { %v1352_v5 = vpop.xlane.xlu1 %1351 }
 0xd42   :  { %3387 = vrsqrt.f32 %v1355_v4  ;;  %v1354_v6 = vmul.f32 0.03125, %v1352_v5 }
 0xd44   :  { %v1356_v7 = vadd.f32 1e-12, %v1354_v6 }
 0xd46   :  { %3389 = vrsqrt.f32 %v1356_v7 }
 0xd4f   :  { %v3388_v8 = vpop.eup %3387 }
 0xd50   :  { %v1359_v9 = vmul.f32 %v3388_v8, %v1343_v54 }
 0xd52   :  { %v1367_v12 = vmul.f32 %v2827_v10, %v1359_v9 }
 0xd53   :  { %v3390_v11 = vpop.eup %3389 }
 0xd54   :  { %v1360_v13 = vmul.f32 %v3390_v11, %v1344_v58  ;;  %v3848_v17 = vadd.f32 %v2828_v14, %v1367_v12 }
 0xd56   :  { %v1368_v15 = vmul.f32 %v2827_v10, %v1360_v13 }
 0xd58   :  { %v3850_v20 = vadd.f32 %v2828_v14, %v1368_v15 }
 0xd5a   :  { %v3857_v23 = vpack.c.bf16 %v3850_v20, %v3848_v17 }
 0xd5c   :  { %3172 = vmatmul.mubr.msk.bf16.vlgmr.msra.gmra.mxu0 %vm83_vm0, %v3857_v23  ;;  %3188 = vmatmul.mubr.msk.bf16.vlgmr.msra.gmra.mxu1 %vm83_vm0, %v3857_v23 }
 0xd5d   :  { %3176 = vmatpush3.bf16.msra.mxu0 %v3339_v22  ;;  %3179 = vmatprep.mubr.msk.bf16.mxu0 %vm3444_vm1, %v3443_v16 }
 0xd5e   :  { %3177 = vmatprep.subr.bf16.mxu0 %v3443_v16  ;;  %3199 = vmatprep.mubr.msk.bf16.mxu1 %vm3444_vm1, %v3443_v16 }
 0xd61   :  { %3178 = vmatpush3.bf16.msra.mxu0 %v3340_v36 }
 0xd62   :  { %3191 = vmatprep.subr.bf16.mxu0 %v3443_v16 }
 0xd64   :  { %3180 = vmatmul.mubr.msk.bf16.vlgmr.msra.gmra.mxu0 %vm83_vm0, %v3857_v23 }
 0xd65   :  { %3193 = vmatprep.mubr.msk.bf16.mxu0 %vm3444_vm1, %v3443_v16 }
 0xe1c   :  { %v1442_v24 = vpop.f32.mrf.mxu0  ;;  %v1578_v26 = vpop.f32.mrf.mxu1 }
 0xe1d   :  { %v1579_v44 = vadd.f32 %v2853_v39, %v1578_v26  ;;  %v1443_v18 = vadd.f32 %v2835_v42, %v1442_v24 }
 0xe1e   :  { %v3173_v27 = vpop.f32.mrf.mxu0  ;;  %v3189_v28 = vpop.f32.mrf.mxu1 }
 0xe1f   :  { %v1585_v49 = vpack.c.bf16 %v1579_v44, %v1579_v44  ;;  %v1449_v21 = vpack.c.bf16 %v1443_v18, %v1443_v18 }
 0xe20   :  { %v1445_v29 = vpop.f32.mrf.mxu0  ;;  %v1581_v30 = vpop.f32.mrf.mxu1 }
 0xe21   :  { %v1582_v50 = vadd.f32 %v2853_v39, %v1581_v30  ;;  %v1446_v33 = vadd.f32 %v2835_v42, %v1445_v29  ;;  %v1711_v52 = vsel %vm491_vm3, %v1585_v49, 0  ;;  %v3341_v29 = vld [vmem:[%s4129_s0 + $0x38] sm:$0xff]  }
 0xe22   :  { %v3174_v31 = vpop.f32.mrf.mxu0  ;;  %v3190_v32 = vpop.f32.mrf.mxu1  ;;  %v3346_v42 = vld [vmem:[%s4130_s3 + $0x38] sm:$0xff]  }
 0xe23   :  { %v1586_v53 = vpack.c.bf16 %v1582_v50, %v1582_v50  ;;  %v1450_v34 = vpack.c.bf16 %v1446_v33, %v1446_v33  ;;  %v3342_v31 = vld [vmem:[%s4129_s0 + $0x30] sm:$0xff]   ;;  %v3343_v32 = vld [vmem:[%s4133_s30 + $0x38] sm:$0xff]  }
 0xe24   :  { %v1510_v37 = vpop.f32.mrf.mxu0 }
 0xe25   :  { %v1511_v38 = vadd.f32 %v2844_v35, %v1510_v37  ;;  %v1757_v54 = vsel %vm491_vm3, %v1586_v53, 0  ;;  %v3345_v37 = vld [vmem:[%s4098_s10 + $0x10] sm:$0xff]  }
 0xe26   :  { %v3181_v40 = vpop.f32.mrf.mxu0 }
 0xe27   :  { %v1517_v41 = vpack.c.bf16 %v1511_v38, %v1511_v38 }
 0xe28   :  { %v1513_v43 = vpop.f32.mrf.mxu0 }
 0xe29   :  { %v1591_v45 = vsel %vm356_vm2, %v1517_v41, 0  ;;  %v1514_v46 = vadd.f32 %v2844_v35, %v1513_v43  ;;  %v3344_v35 = vld [vmem:[%s4133_s30 + $0x30] sm:$0xff]  }
 0xe2a   :  { %v3182_v47 = vpop.f32.mrf.mxu0  ;;  %3192 = vmatpush3.bf16.xpose.msra.mxu0 %v1591_v45 }
 0xe2b   :  { %v1518_v48 = vpack.c.bf16 %v1514_v46, %v1514_v46  ;;  %3203 = vmatprep.subr.bf16.mxu0 %v3443_v16  ;;  %v3347_v47 = vld [vmem:[%s4130_s3 + $0x30] sm:$0xff]  }
 0xe2d   :  { %v1637_v51 = vsel %vm356_vm2, %v1518_v48, 0 }
 0xe2e   :  { %3198 = vmatpush3.bf16.xpose.msra.mxu1 %v1637_v51 }
 0xe2f   :  { %3209 = vmatprep.subr.bf16.mxu1 %v3443_v16 }
 0xe31   :  { %3194 = vmatmul.mubr.msk.bf16.vlgmr.msra.gmra.mxu0 %vm356_vm2, %v1449_v21 }
 0xe32   :  { %3204 = vmatpush3.bf16.msra.mxu0 %v1711_v52  ;;  %3205 = vmatprep.mubr.msk.bf16.mxu0 %vm3444_vm1, %v3443_v16 }
 0xe33   :  { %3215 = vmatprep.subr.bf16.mxu0 %v3443_v16 }
 0xe35   :  { %3200 = vmatmul.mubr.msk.bf16.vlgmr.msra.gmra.mxu1 %vm356_vm2, %v1450_v34 }
 0xe36   :  { %3210 = vmatpush3.bf16.msra.mxu1 %v1757_v54  ;;  %3211 = vmatprep.mubr.msk.bf16.mxu1 %vm3444_vm1, %v3443_v16 }
 0xe37   :  { %3221 = vmatprep.subr.bf16.mxu1 %v3443_v16 }
 0xef1   :  { %v1627_v55 = vpop.f32.mrf.mxu0 }
 0xef2   :  { %v1679_v56 = vmul.f32 0.25, %v1627_v55 }
 0xef3   :  { %v3195_v57 = vpop.f32.mrf.mxu0 }
 0xef4   :  { %v1681_v58 = vadd.f32 %v1679_v56, %v3664_v19  ;;  %v2880_v57 = vld [vmem:[%s4134_s5 + $0x3] ss:$0 sm:$0xff] }
 0xef5   :  { %v1630_v59 = vpop.f32.mrf.mxu0  ;;  %v1673_v60 = vpop.f32.mrf.mxu1 }
 0xef6   :  { %v1680_v61 = vmul.f32 0.25, %v1673_v60  ;;  %v1683_v62 = vsel %vm463_vm4, %v1681_v58, -inf  ;;  %v2889_v59 = vld [vmem:[%s4097_s9 + $0x3] ss:$0 sm:$0xff] }
 0xef7   :  { %v3201_v63 = vpop.f32.mrf.mxu1  ;;  %1684 = vmax.xlane.f32.xlu0 %v1683_v62  ;;  %v3196_v0 = vpop.f32.mrf.mxu0  ;;  %v2871_v62 = vld [vmem:[%s4135_s28 + $0x3] ss:$0 sm:$0xff] }
 0xef8   :  { %v1682_v1 = vadd.f32 %v1680_v61, %v3667_v25 }
 0xef9   :  { %v1676_v2 = vpop.f32.mrf.mxu1 }
 0xefa   :  { %v1686_v3 = vsel %vm463_vm4, %v1682_v1, -inf }
 0xefb   :  { %1687 = vmax.xlane.f32.xlu1 %v1686_v3  ;;  %v3202_v4 = vpop.f32.mrf.mxu1 }
 0xf80   :  { %v1685_v5 = vpop.xlane.xlu0 %1684 }
 0xf81   :  { %v1689_v6 = vsub.f32 %v1681_v58, %v1685_v5 }
 0xf83   :  { %v1691_v7 = vmul.f32 1.442695, %v1689_v6 }
 0xf84   :  { %v1688_v8 = vpop.xlane.xlu1 %1687 }
 0xf85   :  { %3391 = vpow2.f32 %v1691_v7  ;;  %v1690_v9 = vsub.f32 %v1682_v1, %v1688_v8 }
 0xf87   :  { %v1693_v10 = vmul.f32 1.442695, %v1690_v9 }
 0xf89   :  { %3393 = vpow2.f32 %v1693_v10 }
 0xf92   :  { %v3392_v11 = vpop.eup %3391 }
 0xf93   :  { %v1695_v12 = vsel %vm463_vm4, %v3392_v11, 0.0 }
 0xf94   :  { %1696 = vadd.xlane.f32.xlu0 %v1695_v12 }
 0xf96   :  { %v3394_v13 = vpop.eup %3393 }
 0xf97   :  { %v1698_v14 = vsel %vm463_vm4, %v3394_v13, 0.0 }
 0xf98   :  { %1699 = vadd.xlane.f32.xlu1 %v1698_v14 }
0x101d   :  { %v1697_v15 = vpop.xlane.xlu0 %1696 }
0x101e   :  { %3395 = vrcp.f32 %v1697_v15 }
0x1021   :  { %v1700_v22 = vpop.xlane.xlu1 %1699 }
0x1022   :  { %3397 = vrcp.f32 %v1700_v22 }
0x102b   :  { %v3396_v36 = vpop.eup %3395 }
0x102c   :  { %v1703_v24 = vmul.f32 %v3396_v36, %v3392_v11 }
0x102e   :  { %v1705_v26 = vpack.c.bf16 %v1703_v24, %v1703_v24 }
0x102f   :  { %v3398_v27 = vpop.eup %3397 }
0x1030   :  { %3206 = vmatmul.mubr.msk.bf16.vlgmr.msra.gmra.mxu0 %vm463_vm4, %v1705_v26  ;;  %v1704_v28 = vmul.f32 %v3398_v27, %v3394_v13 }
0x1031   :  { %3217 = vmatprep.mubr.msk.bf16.mxu0 %vm3444_vm1, %v3443_v16  ;;  %3216 = vmatpush3.bf16.msra.mxu0 %v3345_v37 }
0x1032   :  { %v1706_v30 = vpack.c.bf16 %v1704_v28, %v1704_v28  ;;  %3229 = vmatprep.subr.bf16.mxu0 %v3443_v16 }
0x1034   :  { %3212 = vmatmul.mubr.msk.bf16.vlgmr.msra.gmra.mxu1 %vm463_vm4, %v1706_v30 }
0x1035   :  { %3222 = vmatpush3.bf16.msra.mxu1 %v3341_v29  ;;  %3225 = vmatprep.mubr.msk.bf16.mxu1 %vm3444_vm1, %v3443_v16 }
0x1036   :  { %3223 = vmatprep.subr.bf16.mxu1 %v3443_v16 }
0x1039   :  { %3224 = vmatpush3.bf16.msra.mxu1 %v3342_v31 }
0x103a   :  { %3237 = vmatprep.subr.bf16.mxu1 %v3443_v16 }
0x103c   :  { %3226 = vmatmul.mubr.msk.bf16.vlgmr.msra.gmra.mxu1 %vm83_vm0, %v3857_v23 }
0x103d   :  { %3238 = vmatpush3.bf16.msra.mxu1 %v3343_v32  ;;  %3241 = vmatprep.mubr.msk.bf16.mxu1 %vm3444_vm1, %v3443_v16 }
0x103e   :  { %3239 = vmatprep.subr.bf16.mxu1 %v3443_v16 }
0x1041   :  { %3240 = vmatpush3.bf16.msra.mxu1 %v3344_v35 }
0x1042   :  { %3251 = vmatprep.subr.bf16.mxu1 %v3443_v16 }
0x1044   :  { %3242 = vmatmul.mubr.msk.bf16.vlgmr.msra.gmra.mxu1 %vm83_vm0, %v3857_v23 }
0x1045   :  { %3253 = vmatprep.mubr.msk.bf16.mxu1 %vm3444_vm1, %v3443_v16 }
0x10f0   :  { %v1747_v38 = vpop.f32.mrf.mxu0 }
0x10f2   :  { %v3207_v39 = vpop.f32.mrf.mxu0 }
0x10f4   :  { %v1750_v40 = vpop.f32.mrf.mxu0  ;;  %v1793_v41 = vpop.f32.mrf.mxu1 }
0x10f5   :  { %v1799_v43 = vpack.c.bf16 %v1793_v41, %v1747_v38 }
0x10f6   :  { %v3208_v44 = vpop.f32.mrf.mxu0  ;;  %v3213_v45 = vpop.f32.mrf.mxu1 }
0x10f7   :  { %3218 = vmatmul.mubr.msk.bf16.vlgmr.msra.gmra.mxu0 %vm356_vm2, %v1799_v43 }
0x10f8   :  { %v1796_v46 = vpop.f32.mrf.mxu1  ;;  %3230 = vmatpush3.bf16.msra.mxu0 %v3346_v42  ;;  %3233 = vmatprep.mubr.msk.bf16.mxu0 %vm3444_vm1, %v3443_v16 }
0x10f9   :  { %3231 = vmatprep.subr.bf16.mxu0 %v3443_v16 }
0x10fa   :  { %v3214_v18 = vpop.f32.mrf.mxu1 }
0x10fc   :  { %v1920_v48 = vpop.f32.mrf.mxu1  ;;  %3232 = vmatpush3.bf16.msra.mxu0 %v3347_v47 }
0x10fd   :  { %3245 = vmatprep.subr.bf16.mxu0 %v3443_v16  ;;  %v1921_v4 = vadd.f32 %v2871_v62, %v1920_v48 }
0x10fe   :  { %v3227_v49 = vpop.f32.mrf.mxu1 }
0x10ff   :  { %3234 = vmatmul.mubr.msk.bf16.vlgmr.msra.gmra.mxu0 %vm83_vm0, %v3857_v23  ;;  %v1927_v9 = vpack.c.bf16 %v1921_v4, %v1921_v4 }
0x1100   :  { %v1923_v50 = vpop.f32.mrf.mxu1  ;;  %3247 = vmatprep.mubr.msk.bf16.mxu0 %vm3444_vm1, %v3443_v16 }
0x1101   :  { %v1924_v10 = vadd.f32 %v2871_v62, %v1923_v50  ;;  %v2865_v62 = vld [vmem:[%s4099_s11 + $0x1] ss:$0 sm:$0xff] }
0x1102   :  { %v3228_v51 = vpop.f32.mrf.mxu1 }
0x1103   :  { %v1928_v13 = vpack.c.bf16 %v1924_v10, %v1924_v10 }
0x1104   :  { %v2056_v21 = vpop.f32.mrf.mxu1 }
0x1105   :  { %v2057_v0 = vadd.f32 %v2889_v59, %v2056_v21 }
0x1106   :  { %v3243_v33 = vpop.f32.mrf.mxu1 }
0x1107   :  { %v2063_v6 = vpack.c.bf16 %v2057_v0, %v2057_v0 }
0x1108   :  { %v2059_v52 = vpop.f32.mrf.mxu1 }
0x1109   :  { %v2060_v7 = vadd.f32 %v2889_v59, %v2059_v52  ;;  %v2189_v11 = vsel %vm491_vm3, %v2063_v6, 0  ;;  %v3348_v52 = vld [vmem:[%s4098_s10 + $0x18] sm:$0xff]  }
0x110a   :  { %v3244_v53 = vpop.f32.mrf.mxu1 }
0x110b   :  { %v2064_v12 = vpack.c.bf16 %v2060_v7, %v2060_v7 }
0x110d   :  { %v2235_v14 = vsel %vm491_vm3, %v2064_v12, 0 }
0x11b7   :  { %v3954_v34 = vpop.f32.mrf.mxu0 }
0x11b9   :  { %v3219_v54 = vpop.f32.mrf.mxu0 }
0x11bb   :  { %v3956_v55 = vpop.f32.mrf.mxu0 }
0x11bd   :  { %v3220_v56 = vpop.f32.mrf.mxu0 }
0x11bf   :  { %v1988_v23 = vpop.f32.mrf.mxu0 }
0x11c0   :  { %v1989_v58 = vadd.f32 %v2880_v57, %v1988_v23 }
0x11c1   :  { %v3235_v60 = vpop.f32.mrf.mxu0 }
0x11c2   :  { %v1995_v61 = vpack.c.bf16 %v1989_v58, %v1989_v58 }
0x11c3   :  { %v1991_v63 = vpop.f32.mrf.mxu0 }
0x11c4   :  { %v2069_v1 = vsel %vm356_vm2, %v1995_v61, 0  ;;  %v1992_v2 = vadd.f32 %v2880_v57, %v1991_v63  ;;  %v1859_v63 = vadd.f32 %v2865_v62, %v3954_v34 }
0x11c5   :  { %v3236_v3 = vpop.f32.mrf.mxu0  ;;  %3246 = vmatpush3.bf16.xpose.msra.mxu0 %v2069_v1 }
0x11c6   :  { %v1996_v5 = vpack.c.bf16 %v1992_v2, %v1992_v2  ;;  %3257 = vmatprep.subr.bf16.mxu0 %v3443_v16  ;;  %v1860_v3 = vadd.f32 %v2865_v62, %v3956_v55 }
0x11c8   :  { %v2115_v8 = vsel %vm356_vm2, %v1996_v5, 0 }
0x11c9   :  { %3252 = vmatpush3.bf16.xpose.msra.mxu1 %v2115_v8 }
0x11ca   :  { %3263 = vmatprep.subr.bf16.mxu1 %v3443_v16 }
0x11cc   :  { %3248 = vmatmul.mubr.msk.bf16.vlgmr.msra.gmra.mxu0 %vm356_vm2, %v1927_v9 }
0x11cd   :  { %3258 = vmatpush3.bf16.msra.mxu0 %v2189_v11  ;;  %3259 = vmatprep.mubr.msk.bf16.mxu0 %vm3444_vm1, %v3443_v16 }
0x11ce   :  { %3269 = vmatprep.subr.bf16.mxu0 %v3443_v16 }
0x11d0   :  { %3254 = vmatmul.mubr.msk.bf16.vlgmr.msra.gmra.mxu1 %vm356_vm2, %v1928_v13 }
0x11d1   :  { %3264 = vmatpush3.bf16.msra.mxu1 %v2235_v14  ;;  %3265 = vmatprep.mubr.msk.bf16.mxu1 %vm3444_vm1, %v3443_v16 }
0x11d2   :  { %3275 = vmatprep.subr.bf16.mxu1 %v3443_v16 }
0x128c   :  { %v2105_v15 = vpop.f32.mrf.mxu0 }
0x128d   :  { %v2157_v22 = vmul.f32 0.25, %v2105_v15 }
0x128e   :  { %v3249_v36 = vpop.f32.mrf.mxu0 }
0x128f   :  { %v2159_v24 = vadd.f32 %v2157_v22, %v3664_v19 }
0x1290   :  { %v2108_v26 = vpop.f32.mrf.mxu0  ;;  %v2151_v27 = vpop.f32.mrf.mxu1 }
0x1291   :  { %v2158_v28 = vmul.f32 0.25, %v2151_v27  ;;  %v2161_v29 = vsel %vm463_vm4, %v2159_v24, -inf }
0x1292   :  { %v3255_v30 = vpop.f32.mrf.mxu1  ;;  %2162 = vmax.xlane.f32.xlu0 %v2161_v29  ;;  %v3250_v31 = vpop.f32.mrf.mxu0 }
0x1293   :  { %v2160_v32 = vadd.f32 %v2158_v28, %v3667_v25 }
0x1294   :  { %v2154_v35 = vpop.f32.mrf.mxu1 }
0x1295   :  { %v2164_v37 = vsel %vm463_vm4, %v2160_v32, -inf }
0x1296   :  { %2165 = vmax.xlane.f32.xlu1 %v2164_v37  ;;  %v3256_v38 = vpop.f32.mrf.mxu1  ;;  %v2903_v37 = vld [vmem:[%s4100_s12 + $0x1] ss:$0 sm:$0xff] }
0x131b   :  { %v2163_v39 = vpop.xlane.xlu0 %2162 }
0x131c   :  { %v2167_v40 = vsub.f32 %v2159_v24, %v2163_v39  ;;  %v3350_v24 = vld [vmem:[%s4102_s14 + $0x10] sm:$0xff]  }
0x131e   :  { %v2169_v41 = vmul.f32 1.442695, %v2167_v40 }
0x131f   :  { %v2166_v42 = vpop.xlane.xlu1 %2165 }
0x1320   :  { %3399 = vpow2.f32 %v2169_v41  ;;  %v2168_v19 = vsub.f32 %v2160_v32, %v2166_v42  ;;  %v2904_v41 = vld [vmem:[%s4101_s13 + $0x1] ss:$0 sm:$0xff] }
0x1322   :  { %v2171_v43 = vmul.f32 1.442695, %v2168_v19 }
0x1324   :  { %3401 = vpow2.f32 %v2171_v43 }
0x132d   :  { %v3400_v44 = vpop.eup %3399 }
0x132e   :  { %v2173_v45 = vsel %vm463_vm4, %v3400_v44, 0.0 }
0x132f   :  { %2174 = vadd.xlane.f32.xlu0 %v2173_v45  ;;  %v3351_v45 = vld [vmem:[%s4104_s16 + $0x38] sm:$0xff]  }
0x1331   :  { %v3402_v46 = vpop.eup %3401 }
0x1332   :  { %v2176_v25 = vsel %vm463_vm4, %v3402_v46, 0.0 }
0x1333   :  { %2177 = vadd.xlane.f32.xlu1 %v2176_v25  ;;  %v3353_v25 = vld [vmem:[%s4104_s16 + $0x28] sm:$0xff]  }
0x13b8   :  { %v2175_v47 = vpop.xlane.xlu0 %2174 }
0x13b9   :  { %3403 = vrcp.f32 %v2175_v47  ;;  %v3354_v47 = vld [vmem:[%s4104_s16 + $0x20] sm:$0xff]  }
0x13bc   :  { %v2178_v18 = vpop.xlane.xlu1 %2177 }
0x13bd   :  { %3405 = vrcp.f32 %v2178_v18  ;;  %v2910_v18 = vld [vmem:[%s4103_s15 + $0x1] ss:$0 sm:$0xff] }
0x13c6   :  { %v3404_v48 = vpop.eup %3403 }
0x13c7   :  { %v2181_v49 = vmul.f32 %v3404_v48, %v3400_v44 }
0x13c9   :  { %v2183_v50 = vpack.c.bf16 %v2181_v49, %v2181_v49 }
0x13ca   :  { %v3406_v51 = vpop.eup %3405 }
0x13cb   :  { %3260 = vmatmul.mubr.msk.bf16.vlgmr.msra.gmra.mxu0 %vm463_vm4, %v2183_v50  ;;  %v2182_v21 = vmul.f32 %v3406_v51, %v3402_v46  ;;  %v3352_v46 = vld [vmem:[%s4104_s16 + $0x30] sm:$0xff]  }
0x13cc   :  { %3271 = vmatprep.mubr.msk.bf16.mxu0 %vm3444_vm1, %v3443_v16  ;;  %3270 = vmatpush3.bf16.msra.mxu0 %v3348_v52 }
0x13cd   :  { %v2184_v33 = vpack.c.bf16 %v2182_v21, %v2182_v21  ;;  %3283 = vmatprep.subr.bf16.mxu0 %v3443_v16 }
0x13cf   :  { %3266 = vmatmul.mubr.msk.bf16.vlgmr.msra.gmra.mxu1 %vm463_vm4, %v2184_v33 }
0x13d0   :  { %3279 = vmatprep.mubr.msk.bf16.mxu1 %vm3444_vm1, %v3443_v16 }
0x148b   :  { %v2225_v53 = vpop.f32.mrf.mxu0 }
0x148d   :  { %v3261_v54 = vpop.f32.mrf.mxu0 }
0x148f   :  { %v2228_v56 = vpop.f32.mrf.mxu0  ;;  %v2271_v57 = vpop.f32.mrf.mxu1 }
0x1490   :  { %v2277_v23 = vpack.c.bf16 %v2271_v57, %v2225_v53 }
0x1491   :  { %v3262_v58 = vpop.f32.mrf.mxu0  ;;  %v3267_v59 = vpop.f32.mrf.mxu1 }
0x1492   :  { %3272 = vmatmul.mubr.msk.bf16.vlgmr.msra.gmra.mxu0 %vm356_vm2, %v2277_v23 }
0x1493   :  { %v2274_v60 = vpop.f32.mrf.mxu1  ;;  %3291 = vmatprep.mubr.msk.bf16.mxu0 %vm3444_vm1, %v3443_v16  ;;  %3284 = vmatpush3.bf16.msra.mxu0 %v3351_v45 }
0x1494   :  { %3285 = vmatprep.subr.bf16.mxu0 %v3443_v16 }
0x1495   :  { %v3268_v61 = vpop.f32.mrf.mxu1 }
0x1497   :  { %3286 = vmatpush3.bf16.msra.mxu0 %v3352_v46 }
0x1498   :  { %3287 = vmatprep.subr.bf16.mxu0 %v3443_v16 }
0x149b   :  { %3288 = vmatpush3.bf16.msra.mxu0 %v3353_v25 }
0x149c   :  { %3289 = vmatprep.subr.bf16.mxu0 %v3443_v16 }
0x149f   :  { %3290 = vmatpush3.bf16.msra.mxu0 %v3354_v47  ;;  %v2932_v47 = vld [vmem:[%s4107_s19 + $0x1] ss:$0 sm:$0xff] }
0x1552   :  { %v2324_v0 = vpop.f32.mrf.mxu0 }
0x1553   :  { %v2331_v1 = vadd.f32 %v2324_v0, %v1859_v63 }
0x1554   :  { %v3273_v2 = vpop.f32.mrf.mxu0 }
0x1555   :  { %v2333_v4 = vadd.f32 %v2331_v1, %v3848_v17 }
0x1556   :  { %v2327_v5 = vpop.f32.mrf.mxu0 }
0x1557   :  { %v2332_v6 = vadd.f32 %v2327_v5, %v1860_v3  ;;  %v2339_v7 = vsel %vm83_vm0, %v2333_v4, 0.0 }
0x1558   :  { %2340 = vadd.xlane.f32.xlu0 %v2339_v7  ;;  %v3274_v8 = vpop.f32.mrf.mxu0  ;;  %v2923_v7 = vld [vmem:[%s4105_s17 + $0x1] ss:$0 sm:$0xff] }
0x1559   :  { %v2334_v9 = vadd.f32 %v2332_v6, %v3850_v20  ;;  %v3349_v20 = vld [vmem:[%s4102_s14 + $0x18] sm:$0xff]  }
0x155a   :  { %3276 = vmatpush3.bf16.msra.mxu1 %v3349_v20 }
0x155b   :  { %v2342_v10 = vsel %vm83_vm0, %v2334_v9, 0.0  ;;  %3277 = vmatprep.subr.bf16.mxu1 %v3443_v16 }
0x155c   :  { %2343 = vadd.xlane.f32.xlu1 %v2342_v10 }
0x155e   :  { %3278 = vmatpush3.bf16.msra.mxu1 %v3350_v24 }
0x155f   :  { %3295 = vmatprep.subr.bf16.mxu1 %v3443_v16 }
0x15e1   :  { %v2341_v11 = vpop.xlane.xlu0 %2340 }
0x15e2   :  { %v2345_v34 = vmul.f32 0.03125, %v2341_v11 }
0x15e4   :  { %v2347_v12 = vsub.f32 %v2333_v4, %v2345_v34 }
0x15e5   :  { %v2344_v13 = vpop.xlane.xlu1 %2343 }
0x15e6   :  { %v2346_v14 = vmul.f32 0.03125, %v2344_v13  ;;  %v2349_v15 = vmul.f32 %v2347_v12, %v2347_v12 }
0x15e8   :  { %v2348_v55 = vsub.f32 %v2334_v9, %v2346_v14  ;;  %v2351_v17 = vsel %vm83_vm0, %v2349_v15, 0.0 }
0x15e9   :  { %2352 = vadd.xlane.f32.xlu0 %v2351_v17 }
0x15ea   :  { %v2350_v22 = vmul.f32 %v2348_v55, %v2348_v55 }
0x15ec   :  { %v2354_v36 = vsel %vm83_vm0, %v2350_v22, 0.0 }
0x15ed   :  { %2355 = vadd.xlane.f32.xlu1 %v2354_v36 }
0x1672   :  { %v2353_v26 = vpop.xlane.xlu0 %2352 }
0x1673   :  { %v2357_v27 = vmul.f32 0.03125, %v2353_v26 }
0x1675   :  { %v2359_v28 = vadd.f32 1e-12, %v2357_v27 }
0x1676   :  { %v2356_v29 = vpop.xlane.xlu1 %2355 }
0x1677   :  { %3407 = vrsqrt.f32 %v2359_v28  ;;  %v2358_v30 = vmul.f32 0.03125, %v2356_v29 }
0x1679   :  { %v2360_v31 = vadd.f32 1e-12, %v2358_v30 }
0x167b   :  { %3409 = vrsqrt.f32 %v2360_v31  ;;  %v3355_v31 = vld [vmem:[%s4108_s20 + $0x8] sm:$0xff]  }
0x1684   :  { %v3408_v32 = vpop.eup %3407 }
0x1685   :  { %v2363_v35 = vmul.f32 %v3408_v32, %v2347_v12  ;;  %v3356_v32 = vld [vmem:[%s4108_s20] sm:$0xff]  }
0x1687   :  { %v2371_v40 = vmul.f32 %v2903_v37, %v2363_v35 }
0x1688   :  { %v3410_v38 = vpop.eup %3409 }
0x1689   :  { %v2364_v39 = vmul.f32 %v3410_v38, %v2348_v55  ;;  %v2379_v19 = vadd.f32 %v2904_v41, %v2371_v40 }
0x168b   :  { %v2372_v42 = vmul.f32 %v2903_v37, %v2364_v39 }
0x168d   :  { %v2380_v43 = vadd.f32 %v2904_v41, %v2372_v42 }
0x168f   :  { %v2381_v44 = vpack.c.bf16 %v2380_v43, %v2379_v19 }
0x1691   :  { %3280 = vmatmul.mubr.msk.bf16.vlgmr.msra.gmra.mxu1 %vm83_vm0, %v2381_v44  ;;  %v2931_v44 = vld [vmem:[%s4106_s18 + $0x1] ss:$0 sm:$0xff] }
0x1692   :  { %3299 = vmatprep.mubr.msk.bf16.mxu1 %vm3444_vm1, %v3443_v16  ;;  %3296 = vmatpush3.bf16.msra.mxu1 %v3355_v31 }
0x1693   :  { %3297 = vmatprep.subr.bf16.mxu1 %v3443_v16 }
0x1696   :  { %3298 = vmatpush3.bf16.msra.mxu1 %v3356_v32 }
0x1697   :  { %3303 = vmatprep.subr.bf16.mxu1 %v3443_v16 }
0x1751   :  { %v2444_v48 = vpop.f32.mrf.mxu1 }
0x1752   :  { %v2445_v49 = vadd.f32 %v2910_v18, %v2444_v48 }
0x1753   :  { %v3281_v50 = vpop.f32.mrf.mxu1 }
0x1754   :  { %v2453_v51 = vmul.f32 0.044715, %v2445_v49  ;;  %v2451_v1 = vmul.f32 0.5, %v2445_v49 }
0x1755   :  { %v2447_v21 = vpop.f32.mrf.mxu1 }
0x1756   :  { %v2455_v33 = vmul.f32 %v2453_v51, %v2445_v49  ;;  %v2448_v52 = vadd.f32 %v2910_v18, %v2447_v21  ;;  %v3357_v21 = vld [vmem:[%s4110_s22 + $0x8] sm:$0xff]  }
0x1757   :  { %v3282_v53 = vpop.f32.mrf.mxu1 }
0x1758   :  { %v2457_v54 = vmul.f32 %v2455_v33, %v2445_v49  ;;  %v2454_v56 = vmul.f32 0.044715, %v2448_v52  ;;  %v2452_v2 = vmul.f32 0.5, %v2448_v52  ;;  %v3358_v33 = vld [vmem:[%s4110_s22] sm:$0xff]   ;;  %s3446_s22 = smov [#allocation2]  }
0x1759   :  { %s2751_s3 = sshll.u32 %s3446_s22, 4  ;;  %s2752_s3 = int_to_ptr.vmem [resolvable:$true] %s2751_s3 }
0x175a   :  { %v2459_v57 = vadd.f32 %v2457_v54, %v2445_v49  ;;  %v2456_v23 = vmul.f32 %v2454_v56, %v2448_v52  ;;  %p3426_p1 = scmp.lt.s32.totalorder %s2752_s3, %s2752_s3 }
0x175c   :  { %v2461_v58 = vmul.f32 0.7978846, %v2459_v57  ;;  %v2458_v59 = vmul.f32 %v2456_v23, %v2448_v52 }
0x175e   :  { %3411 = vtanh.f32 %v2461_v58  ;;  %v2460_v60 = vadd.f32 %v2458_v59, %v2448_v52  ;;  %v2933_v52 = vld [vmem:[%s4109_s21] ss:$0 sm:$0xff]  ;;  %s3421_s21 = scalar_lea.vmem %s2752_s3, 32 }
0x175f   :  { %p3422_p0 = scmp.ne.s32.totalorder %s2752_s3, %s3421_s21  ;;  %p3427_p2 = scmp.lt.s32.totalorder %s3421_s21, %s3421_s21 }
0x1760   :  { %v2462_v61 = vmul.f32 0.7978846, %v2460_v60 }
0x1761   :  { %p3428_p3 = por %p3427_p2, %p3426_p1 }
0x1762   :  { %3413 = vtanh.f32 %v2462_v61 }
0x1763   :  { %p3429_p4 = pnand %p3428_p3, %p3422_p0 }
0x176b   :  { %v3412_v62 = vpop.eup %3411 }
0x176c   :  { %v2465_v63 = vadd.f32 1.0, %v3412_v62 }
0x176e   :  { %v2467_v4 = vmul.f32 %v2465_v63, %v2451_v1 }
0x176f   :  { %v3414_v0 = vpop.eup %3413 }
0x1770   :  { %v2466_v3 = vadd.f32 1.0, %v3414_v0 }
0x1772   :  { %v2468_v5 = vmul.f32 %v2466_v3, %v2452_v2 }
0x1774   :  { %v2469_v6 = vpack.c.bf16 %v2468_v5, %v2467_v4 }
0x1776   :  { %3292 = vmatmul.mubr.msk.bf16.vlgmr.msra.gmra.mxu0 %vm1286_vm5, %v2469_v6 }
0x1836   :  { %v2548_v8 = vpop.f32.mrf.mxu0 }
0x1837   :  { %v2549_v9 = vadd.f32 %v2923_v7, %v2548_v8 }
0x1838   :  { %v3293_v10 = vpop.f32.mrf.mxu0 }
0x1839   :  { %v2555_v11 = vadd.f32 %v2549_v9, %v2379_v19 }
0x183a   :  { %v2551_v34 = vpop.f32.mrf.mxu0 }
0x183b   :  { %v2552_v12 = vadd.f32 %v2923_v7, %v2551_v34  ;;  %v2561_v13 = vsel %vm83_vm0, %v2555_v11, 0.0 }
0x183c   :  { %2562 = vadd.xlane.f32.xlu1 %v2561_v13  ;;  %v3294_v14 = vpop.f32.mrf.mxu0 }
0x183d   :  { %v2556_v15 = vadd.f32 %v2552_v12, %v2380_v43 }
0x183f   :  { %v2564_v55 = vsel %vm83_vm0, %v2556_v15, 0.0 }
0x1840   :  { %2565 = vadd.xlane.f32.xlu0 %v2564_v55 }
0x18c5   :  { %v2563_v17 = vpop.xlane.xlu1 %2562 }
0x18c6   :  { %v2567_v22 = vmul.f32 0.03125, %v2563_v17 }
0x18c8   :  { %v2569_v36 = vsub.f32 %v2555_v11, %v2567_v22 }
0x18c9   :  { %v2566_v20 = vpop.xlane.xlu0 %2565 }
0x18ca   :  { %v2568_v24 = vmul.f32 0.03125, %v2566_v20  ;;  %v2571_v26 = vmul.f32 %v2569_v36, %v2569_v36 }
0x18cc   :  { %v2570_v27 = vsub.f32 %v2556_v15, %v2568_v24  ;;  %v2573_v28 = vsel %vm83_vm0, %v2571_v26, 0.0 }
0x18cd   :  { %2574 = vadd.xlane.f32.xlu1 %v2573_v28 }
0x18ce   :  { %v2572_v29 = vmul.f32 %v2570_v27, %v2570_v27 }
0x18d0   :  { %v2576_v30 = vsel %vm83_vm0, %v2572_v29, 0.0 }
0x18d1   :  { %2577 = vadd.xlane.f32.xlu0 %v2576_v30 }
0x1956   :  { %v2575_v35 = vpop.xlane.xlu1 %2574 }
0x1957   :  { %v2579_v37 = vmul.f32 0.03125, %v2575_v35 }
0x1959   :  { %v2581_v38 = vadd.f32 1e-12, %v2579_v37 }
0x195a   :  { %v2578_v39 = vpop.xlane.xlu0 %2577 }
0x195b   :  { %3415 = vrsqrt.f32 %v2581_v38  ;;  %v2580_v40 = vmul.f32 0.03125, %v2578_v39 }
0x195d   :  { %v2582_v41 = vadd.f32 1e-12, %v2580_v40 }
0x195f   :  { %3417 = vrsqrt.f32 %v2582_v41 }
0x1968   :  { %v3416_v42 = vpop.eup %3415 }
0x1969   :  { %v2585_v19 = vmul.f32 %v3416_v42, %v2569_v36 }
0x196b   :  { %v2593_v46 = vmul.f32 %v2931_v44, %v2585_v19 }
0x196c   :  { %v3418_v43 = vpop.eup %3417 }
0x196d   :  { %v2586_v45 = vmul.f32 %v3418_v43, %v2570_v27  ;;  %v2601_v48 = vadd.f32 %v2932_v47, %v2593_v46 }
0x196f   :  { %v2594_v25 = vmul.f32 %v2931_v44, %v2586_v45 }
0x1971   :  { %v2602_v18 = vadd.f32 %v2932_v47, %v2594_v25 }
0x1973   :  { %v2604_v49 = vrot.slane %v2602_v18, 7 }
0x1975   :  { %v2607_v50 = vsel %vm2606_vm6, %v2601_v48, %v2604_v49 }
0x1976   :  { %v2608_v51 = vpack.c.bf16 %v2607_v50, %v2607_v50 }
0x1978   :  { %3300 = vmatmul.mubr.msk.bf16.vlgmr.msra.gmra.mxu1 %vm83_vm0, %v2608_v51 }
0x1979   :  { %3307 = vmatprep.mubr.msk.bf16.mxu1 %vm3444_vm1, %v3443_v16  ;;  %3304 = vmatpush3.bf16.msra.mxu1 %v3357_v21 }
0x197a   :  { %3305 = vmatprep.subr.bf16.mxu1 %v3443_v16  ;;  %v2937_v16 = vld [vmem:[%s4111_s23] ss:$0 sm:$0xff] }
0x197d   :  { %3306 = vmatpush3.bf16.msra.mxu1 %v3358_v33 }
0x1a38   :  { %v2669_v53 = vpop.f32.mrf.mxu1 }
0x1a39   :  { %v2670_v54 = vadd.f32 %v2933_v52, %v2669_v53 }
0x1a3a   :  { %v3301_v56 = vpop.f32.mrf.mxu1 }
0x1a3b   :  { %3419 = vtanh.f32 %v2670_v54 }
0x1a3c   :  { %v2672_v57 = vpop.f32.mrf.mxu1 }
0x1a3e   :  { %v3302_v23 = vpop.f32.mrf.mxu1 }
0x1a48   :  { %v3420_v58 = vpop.eup %3419 }
0x1a49   :  { %v2676_v59 = vpack.c.bf16 %v3420_v58, %v3420_v58 }
0x1a4b   :  { %3308 = vmatmul.mubr.msk.bf16.vlgmr.msra.gmra.mxu1 %vm83_vm0, %v2676_v59 }
0x1b0b   :  { %v2737_v60 = vpop.f32.mrf.mxu1 }
0x1b0c   :  { %v2738_v61 = vadd.f32 %v2937_v16, %v2737_v60 }
0x1b0d   :  { %v3309_v62 = vpop.f32.mrf.mxu1 }
0x1b0e   :  { %2744 = vst.msk [vmem:[#allocation2] sm:$0x3] %vm2743_vm7, %v2738_v61 }
0x1b0f   :  { %v2740_v63 = vpop.f32.mrf.mxu1 }
0x1b10   :  { %3432 = shalt.err (!%p3429_p4)
}
0x1b11   :  { %2754 = dma.vmem_to_hbm [thread:$0]  %s2752_s3, 32, %s4112_s24, [#allocation3]   ;;  %v3310_v0 = vpop.f32.mrf.mxu1 }
0x1b12   :  { %3441 = dma.done.wait [#allocation3], 32  }
0x1b13   :  { %3442 = vsyncadd [#allocation3], 4294967264 }
0x1b14   :  { %2758 = vsyncpa [#allocation3], 1 }

</bundles_post_ra>
